<compile_context>
chip_gen: v7x
topology: tpu7x:2x2x1
jax: 0.10.0
libtpu: 0.0.40
codegen_flags: <defaults>
</compile_context>

<pallas_src>
import functools
import math

import jax
import jax.numpy as jnp
from jax.experimental import pallas as pl
from jax.experimental.pallas import tpu as pltpu


# ----------------------------------------------------------------------------
# Helpers
# ----------------------------------------------------------------------------

def _round_up(x, m):
    return ((x + m - 1) // m) * m


def kaiming_normal(key, shape, fan_in):
    return (jnp.sqrt(2.0 / fan_in) * jax.random.normal(key, shape)).astype(jnp.float32)


def _batch_tile(tb, max_tile):
    # Either the whole batch (block == full dim) or a multiple-of-8 tile.
    return tb if tb <= max_tile else max_tile


# ----------------------------------------------------------------------------
# Kernel 1: conv1 with in-kernel (stride-folded) im2col
# ----------------------------------------------------------------------------

def _conv1_kernel(x_ref, w_ref, b_ref, o_ref, *, keff, oh, ow, out_c, scale):
    # x_ref: (TBT, hs, ow, kc) bf16   -- height-s2d + width-tap-concat input
    # w_ref: (keff, kc, out_c) bf16   -- one (kc, out_c) matrix per height tap
    # b_ref: (1, out_c) f32
    # o_ref: (TBT, oh, ow, out_c) bf16  (NHWC conv1 output + ReLU)
    tbt = x_ref.shape[0]
    kc = x_ref.shape[3]
    m = tbt * oh * ow
    acc = jnp.zeros((m, out_c), jnp.float32)
    for di in range(keff):                                   # unrolled (keff=2)
        xs = x_ref[:, di:di + oh, :, :]                      # (TBT, oh, ow, kc)
        acc = acc + jnp.dot(xs.reshape(m, kc), w_ref[di],
                            preferred_element_type=jnp.float32)
    if scale != 1.0:                                         # uint8 *(1/255)
        acc = acc * jnp.float32(scale)
    acc = jnp.maximum(acc + b_ref[...], 0.0)
    o_ref[...] = acc.astype(o_ref.dtype).reshape(tbt, oh, ow, out_c)


def conv1_forward(xw, w1k, b1k, *, keff, oh, ow, out_c, scale, batch_tile=64):
    tb, hs, ow_in, kc = xw.shape
    assert ow_in == ow
    tbt = _batch_tile(tb, batch_tile)
    kernel = functools.partial(_conv1_kernel, keff=keff, oh=oh, ow=ow,
                               out_c=out_c, scale=scale)
    return pl.pallas_call(
        kernel,
        out_shape=jax.ShapeDtypeStruct((tb, oh, ow, out_c), jnp.bfloat16),
        grid=(pl.cdiv(tb, tbt),),
        in_specs=[
            pl.BlockSpec((tbt, hs, ow, kc), lambda i: (i, 0, 0, 0)),
            pl.BlockSpec((keff, kc, out_c), lambda i: (0, 0, 0)),
            pl.BlockSpec((1, out_c), lambda i: (0, 0)),
        ],
        out_specs=pl.BlockSpec((tbt, oh, ow, out_c), lambda i: (i, 0, 0, 0)),
        compiler_params=pltpu.CompilerParams(
            dimension_semantics=("parallel",),
            vmem_limit_bytes=32 * 1024 * 1024,
        ),
    )(xw, w1k, b1k)


# ----------------------------------------------------------------------------
# Kernel 2: conv2 + conv3 + pi/v MLP head, fully fused
# ----------------------------------------------------------------------------

def _tail_kernel(p2_ref, w2_ref, b2_ref, w3_ref, b3_ref,
                 w1h_ref, b1h_ref, w2h_ref, b2h_ref,
                 head_ref, conv_ref, *, n_pos, action_size):
    # p2_ref : (n_pos, TBT, k2*k2*c1) bf16  -- position-major conv2 patches
    # w2_ref : (k2*k2*c1, c2) bf16 ; b2_ref: (1, c2) f32
    # w3_ref : (n_pos, c2, c3) bf16 ; b3_ref: (1, c3) f32   (conv3 per-tap)
    # w1h/b1h/w2h/b2h: MLP head (lane-padded)
    # head_ref: (TBT, Npad) f32  -- lanes [0,A): softmax(pi); lane A: value
    # conv_ref: (TBT, c3) f32    -- flattened conv features (spatial 1x1)
    tbt = p2_ref.shape[1]
    c3 = w3_ref.shape[2]

    acc3 = jnp.zeros((tbt, c3), jnp.float32)
    for p in range(n_pos):                                   # unrolled (9)
        xp = p2_ref[p]                                       # (TBT, 512)
        a2 = jnp.dot(xp, w2_ref[...], preferred_element_type=jnp.float32)
        h2 = jnp.maximum(a2 + b2_ref[...], 0.0).astype(jnp.bfloat16)
        acc3 = acc3 + jnp.dot(h2, w3_ref[p],
                              preferred_element_type=jnp.float32)
    feat = jnp.maximum(acc3 + b3_ref[...], 0.0)              # (TBT, c3) f32
    conv_ref[...] = feat                                     # f32 conv output

    h1 = jnp.dot(feat.astype(jnp.bfloat16), w1h_ref[...],
                 preferred_element_type=jnp.float32) + b1h_ref[...]
    h1 = jnp.maximum(h1, 0.0)
    logits = jnp.dot(h1.astype(jnp.bfloat16), w2h_ref[...],
                     preferred_element_type=jnp.float32) + b2h_ref[...]

    lane = jax.lax.broadcasted_iota(jnp.int32, logits.shape, dimension=1)
    pi_mask = lane < action_size
    masked = jnp.where(pi_mask, logits, -1e30)
    mmax = jnp.max(masked, axis=-1, keepdims=True)
    e = jnp.where(pi_mask, jnp.exp(masked - mmax), 0.0)
    denom = jnp.sum(e, axis=-1, keepdims=True)
    pi = e / denom                                           # exact denominator
    head_ref[...] = jnp.where(pi_mask, pi,
                              jnp.where(lane == action_size, logits, 0.0))


def tail_forward(p2, w2m, b2, w3m, b3, w1h, b1h, w2h, b2h, *,
                 action_size, batch_tile=128):
    n_pos, tb, kdim = p2.shape
    c2 = w2m.shape[1]
    c3 = w3m.shape[2]
    hpad = w1h.shape[1]
    npad = w2h.shape[1]
    tbt = _batch_tile(tb, batch_tile)
    kernel = functools.partial(_tail_kernel, n_pos=n_pos, action_size=action_size)
    head, conv = pl.pallas_call(
        kernel,
        out_shape=(jax.ShapeDtypeStruct((tb, npad), jnp.float32),
                   jax.ShapeDtypeStruct((tb, c3), jnp.float32)),
        grid=(pl.cdiv(tb, tbt),),
        in_specs=[
            pl.BlockSpec((n_pos, tbt, kdim), lambda i: (0, i, 0)),
            pl.BlockSpec((kdim, c2), lambda i: (0, 0)),
            pl.BlockSpec((1, c2), lambda i: (0, 0)),
            pl.BlockSpec((n_pos, c2, c3), lambda i: (0, 0, 0)),
            pl.BlockSpec((1, c3), lambda i: (0, 0)),
            pl.BlockSpec((c3, hpad), lambda i: (0, 0)),
            pl.BlockSpec((1, hpad), lambda i: (0, 0)),
            pl.BlockSpec((hpad, npad), lambda i: (0, 0)),
            pl.BlockSpec((1, npad), lambda i: (0, 0)),
        ],
        out_specs=(pl.BlockSpec((tbt, npad), lambda i: (i, 0)),
                   pl.BlockSpec((tbt, c3), lambda i: (i, 0))),
        compiler_params=pltpu.CompilerParams(
            dimension_semantics=("parallel",),
            vmem_limit_bytes=32 * 1024 * 1024,
        ),
    )(p2, w2m, b2, w3m, b3, w1h, b1h, w2h, b2h)
    return head, conv


# ----------------------------------------------------------------------------
# Parameter init (raw f32 weights for the reference + kernel-layout weights)
# ----------------------------------------------------------------------------

def init_params(key, image_shape, channels, kernel_sizes, strides,
                hidden_size, action_size):
    c, h, w = image_shape
    c1, c2, c3 = channels
    k1, k2, k3 = kernel_sizes
    s1, s2, s3 = strides

    assert h % s1 == 0 and w % s1 == 0 and k1 % s1 == 0, \
        "conv1 stride-folding requires s1 | h, w, k1"
    keff = k1 // s1
    hs, ws = h // s1, w // s1
    oh1, ow1 = hs - keff + 1, ws - keff + 1
    oh2, ow2 = (oh1 - k2) // s2 + 1, (ow1 - k2) // s2 + 1
    oh3, ow3 = (oh2 - k3) // s3 + 1, (ow2 - k3) // s3 + 1
    assert oh3 == 1 and ow3 == 1 and k3 == oh2 and k3 == ow2, \
        "fused tail kernel assumes conv3 output spatial == 1x1"

    keys = jax.random.split(key, 5)

    # conv1 (OIHW) + stride-folded kernel layout (keff, keff*s1*s1*c, c1)
    w1 = kaiming_normal(keys[0], (c1, c, k1, k1), fan_in=c * k1 * k1)
    b1 = jnp.zeros((c1,), jnp.float32)
    w1k = (w1.reshape(c1, c, keff, s1, keff, s1)
              .transpose(2, 4, 3, 5, 1, 0)            # (di, dj, yi, xi, c, oc)
              .reshape(keff, keff * s1 * s1 * c, c1)).astype(jnp.bfloat16)
    b1k = b1.reshape(1, c1)

    # conv2 as a (k2*k2*c1, c2) matrix with (kh, kw, cin) row order
    w2 = kaiming_normal(keys[1], (c2, c1, k2, k2), fan_in=c1 * k2 * k2)
    b2 = jnp.zeros((c2,), jnp.float32)
    w2m = jnp.transpose(w2, (2, 3, 1, 0)).reshape(k2 * k2 * c1, c2).astype(jnp.bfloat16)
    b2k = b2.reshape(1, c2)

    # conv3 as per-tap (n_pos, c2, c3) matrices, tap = (ky, kx) row-major
    w3 = kaiming_normal(keys[2], (c3, c2, k3, k3), fan_in=c2 * k3 * k3)
    b3 = jnp.zeros((c3,), jnp.float32)
    w3m = jnp.transpose(w3, (2, 3, 1, 0)).reshape(k3 * k3, c2, c3).astype(jnp.bfloat16)
    b3k = b3.reshape(1, c3)

    conv_out_size = c3 * oh3 * ow3
    hpad = _round_up(hidden_size, 128)
    npad = _round_up(action_size + 1, 128)

    w1h = kaiming_normal(keys[3], (conv_out_size, hidden_size), fan_in=conv_out_size)
    b1h = jnp.zeros((hidden_size,), jnp.float32)
    w2h = kaiming_normal(keys[4], (hidden_size, action_size + 1), fan_in=hidden_size)
    b2h = jnp.zeros((action_size + 1,), jnp.float32)

    w1hp = jnp.pad(w1h, ((0, 0), (0, hpad - hidden_size))).astype(jnp.bfloat16)
    b1hp = jnp.pad(b1h, (0, hpad - hidden_size)).reshape(1, hpad)
    w2hp = jnp.pad(w2h, ((0, hpad - hidden_size),
                         (0, npad - (action_size + 1)))).astype(jnp.bfloat16)
    b2hp = jnp.pad(b2h, (0, npad - (action_size + 1))).reshape(1, npad)

    cfg = dict(s1=s1, keff=keff, hs=hs, ws=ws, oh1=oh1, ow1=ow1,
               k2=k2, s2=s2, oh2=oh2, ow2=ow2, c1=c1, c2=c2, c3=c3)

    return dict(
        cfg=cfg, action_size=action_size, conv_out_size=conv_out_size,
        # raw f32 weights (reference path)
        conv_w=[w1, w2, w3], conv_b=[b1, b2, b3], conv_strides=[s1, s2, s3],
        w1h_f32=w1h, b1h_f32=b1h, w2h_f32=w2h, b2h_f32=b2h,
        # kernel-layout weights
        w1k=w1k, b1k=b1k, w2m=w2m, b2k=b2k, w3m=w3m, b3k=b3k,
        w1hp=w1hp, b1hp=b1hp, w2hp=w2hp, b2hp=b2hp)


# ----------------------------------------------------------------------------
# Forward pass
# ----------------------------------------------------------------------------

def atari_pg_forward(params, observation, prev_action=None, prev_reward=None):
    # prev_action / prev_reward are accepted for API parity but unused (as in
    # the reference forward).
    cfg = params["cfg"]
    img_shape = observation.shape[-3:]
    lead_shape = observation.shape[:-3]
    tb = int(math.prod(lead_shape)) if lead_shape else 1
    obs = observation.reshape((tb,) + img_shape)            # (TB, C, H, W)

    scale0 = (1.0 / 255.0) if observation.dtype == jnp.uint8 else 1.0
    x = obs.astype(jnp.bfloat16)                            # raw counts if uint8

    c = img_shape[0]
    s1, keff = cfg["s1"], cfg["keff"]
    hs, ws, oh1, ow1 = cfg["hs"], cfg["ws"], cfg["oh1"], cfg["ow1"]

    # Single XLA pass: NCHW -> stride-folded NHWC (space-to-depth by s1) plus
    # width-tap concat.  No NHWC round-trip, no full im2col patch matrix.
    xs2d = (x.reshape(tb, c, hs, s1, ws, s1)
              .transpose(0, 2, 4, 3, 5, 1)
              .reshape(tb, hs, ws, s1 * s1 * c))
    xw = jnp.concatenate([xs2d[:, :, dj:dj + ow1, :] for dj in range(keff)],
                         axis=-1)                           # (TB, hs, ow1, keff*s1*s1*c)

    # conv1 (remaining height-tap im2col fused in-kernel)
    y1 = conv1_forward(xw, params["w1k"], params["b1k"], keff=keff, oh=oh1,
                       ow=ow1, out_c=cfg["c1"], scale=scale0)  # (TB, oh1, ow1, c1) bf16

    # conv2 patch extraction, position-major (tiny tensor: oh2*ow2 x k2*k2*c1)
    k2, s2, oh2, ow2, c1 = cfg["k2"], cfg["s2"], cfg["oh2"], cfg["ow2"], cfg["c1"]
    p2 = jnp.stack(
        [y1[:, s2 * yy:s2 * yy + k2, s2 * xx:s2 * xx + k2, :].reshape(tb, k2 * k2 * c1)
         for yy in range(oh2) for xx in range(ow2)],
        axis=0)                                             # (oh2*ow2, TB, k2*k2*c1)

    # conv2 + conv3 + pi/v MLP head fused in one kernel; f32 conv features come
    # out as the second kernel output (no separate cast / transpose pass).
    a_sz = params["action_size"]
    head, feat = tail_forward(p2, params["w2m"], params["b2k"], params["w3m"],
                              params["b3k"], params["w1hp"], params["b1hp"],
                              params["w2hp"], params["b2hp"], action_size=a_sz)

    pi = head[:, :a_sz]
    v = head[:, a_sz]
    conv = feat.reshape(tb, cfg["c3"], 1, 1)                # NCHW (spatial 1x1)

    # restore_leading_dims
    pi = pi.reshape(lead_shape + (a_sz,))
    v = v.reshape(lead_shape)
    conv = conv.reshape(lead_shape + conv.shape[1:])
    return pi, v, conv


# ----------------------------------------------------------------------------
# Pure-JAX reference (same bf16-input / f32-accumulate policy)
# ----------------------------------------------------------------------------

def reference_forward(params, observation):
    b = observation.shape[0]
    x = observation.astype(jnp.bfloat16)
    for li, (wc, bc, s) in enumerate(zip(params["conv_w"], params["conv_b"],
                                         params["conv_strides"])):
        y = jax.lax.conv_general_dilated(
            x, wc.astype(jnp.bfloat16), window_strides=(s, s), padding="VALID",
            dimension_numbers=("NCHW", "OIHW", "NCHW"),
            preferred_element_type=jnp.float32)
        if li == 0 and observation.dtype == jnp.uint8:
            y = y * (1.0 / 255.0)
        y = jnp.maximum(y + bc[None, :, None, None], 0.0)
        x = y.astype(jnp.bfloat16)
    conv = x.astype(jnp.float32)
    feat = x.reshape(b, -1)
    h = jnp.maximum(
        jnp.dot(feat, params["w1h_f32"].astype(jnp.bfloat16),
                preferred_element_type=jnp.float32) + params["b1h_f32"], 0.0)
    logits = jnp.dot(h.astype(jnp.bfloat16), params["w2h_f32"].astype(jnp.bfloat16),
                     preferred_element_type=jnp.float32) + params["b2h_f32"]
    pi = jax.nn.softmax(logits[:, :-1], axis=-1)
    v = logits[:, -1]
    return pi, v, conv


# ----------------------------------------------------------------------------
# Main
# ----------------------------------------------------------------------------

if __name__ == "__main__":
    key = jax.random.PRNGKey(0)
    k_param, k_obs = jax.random.split(key)

    B = 2
    image_shape = (4, 36, 36)        # (c, h, w): 36 -> 8 -> 3 -> 1 feature maps
    action_size = 6
    hidden_size = 128
    channels = [32, 64, 64]
    kernel_sizes = [8, 4, 3]
    strides = [4, 2, 1]

    params = init_params(k_param, image_shape, channels, kernel_sizes, strides,
                         hidden_size, action_size)

    obs = jax.random.randint(k_obs, (B,) + image_shape, 0, 256,
                             dtype=jnp.int32).astype(jnp.uint8)
    prev_action = jnp.zeros((B,), jnp.int32)
    prev_reward = jnp.zeros((B,), jnp.float32)

    fwd = jax.jit(lambda o, a, r: atari_pg_forward(params, o, a, r))
    pi, v, conv = fwd(obs, prev_action, prev_reward)
    jax.block_until_ready((pi, v, conv))

    # sanity check against a pure-JAX reference with the same numerics policy
    pi_r, v_r, conv_r = reference_forward(params, obs)

    assert pi.shape == (B, action_size) and v.shape == (B,)
    assert conv.shape == (B, channels[-1], 1, 1)
    assert jnp.allclose(jnp.sum(pi, axis=-1), 1.0, atol=1e-3)
    assert jnp.allclose(pi, pi_r, atol=2e-2, rtol=2e-2)
    assert jnp.allclose(v, v_r, atol=2e-2, rtol=2e-2)
    assert jnp.allclose(conv, conv_r, atol=2e-2, rtol=2e-2)

    print("KERNEL_OK")
</pallas_src>

<mosaic_0001>
module attributes {stable_mosaic.version = 11 : i64} {
  func.func @_conv1_kernel(%arg0: i32, %arg1: memref<2x9x8x128xbf16, #tpu.memory_space<vmem>>, %arg2: memref<2x128x32xbf16, #tpu.memory_space<vmem>>, %arg3: memref<1x32xf32, #tpu.memory_space<vmem>>, %arg4: memref<2x8x8x32xbf16, #tpu.memory_space<vmem>>) attributes {dimension_semantics = [#tpu.dimension_semantics<parallel>], iteration_bounds = array<i64: 1>, scalar_prefetch = 0 : i64, scratch_operands = 0 : i64, tpu.core_type = #tpu.core_type<tc>, window_params = [{transform_indices = @transform_0, window_bounds = array<i64: 2, 9, 8, 128>}, {pipeline_mode = #tpu.pipeline_mode<synchronous>, transform_indices = @transform_1, window_bounds = array<i64: 2, 128, 32>}, {pipeline_mode = #tpu.pipeline_mode<synchronous>, transform_indices = @transform_2, window_bounds = array<i64: 1, 32>}, {transform_indices = @transform_3, window_bounds = array<i64: 2, 8, 8, 32>}]} {
    %cst = arith.constant 0.000000e+00 : f32
    %0 = vector.broadcast %cst : f32 to vector<128x32xf32>
    %c0 = arith.constant 0 : index
    %c0_0 = arith.constant 0 : index
    %c0_1 = arith.constant 0 : index
    %c0_2 = arith.constant 0 : index
    %1 = vector.load %arg1[%c0, %c0_0, %c0_1, %c0_2] : memref<2x9x8x128xbf16, #tpu.memory_space<vmem>>, vector<2x8x8x128xbf16>
    %2 = vector.shape_cast %1 : vector<2x8x8x128xbf16> to vector<128x128xbf16>
    %c0_3 = arith.constant 0 : index
    %c0_4 = arith.constant 0 : index
    %c0_5 = arith.constant 0 : index
    %3 = vector.load %arg2[%c0_3, %c0_4, %c0_5] : memref<2x128x32xbf16, #tpu.memory_space<vmem>>, vector<1x128x32xbf16>
    %4 = vector.shape_cast %3 : vector<1x128x32xbf16> to vector<128x32xbf16>
    %cst_6 = arith.constant dense<0.000000e+00> : vector<128x32xf32>
    %5 = tpu.matmul %2, %4, %cst_6 {dimension_numbers = #tpu.dot_dimension_numbers<[1], [0], [0], [1], [0, 0, 1, 1], [], []>} : vector<128x128xbf16>, vector<128x32xbf16>, vector<128x32xf32> -> vector<128x32xf32>
    %6 = arith.addf %0, %5 : vector<128x32xf32>
    %c0_7 = arith.constant 0 : index
    %c1 = arith.constant 1 : index
    %c0_8 = arith.constant 0 : index
    %c0_9 = arith.constant 0 : index
    %7 = vector.load %arg1[%c0_7, %c1, %c0_8, %c0_9] : memref<2x9x8x128xbf16, #tpu.memory_space<vmem>>, vector<2x8x8x128xbf16>
    %8 = vector.shape_cast %7 : vector<2x8x8x128xbf16> to vector<128x128xbf16>
    %c1_10 = arith.constant 1 : index
    %c0_11 = arith.constant 0 : index
    %c0_12 = arith.constant 0 : index
    %9 = vector.load %arg2[%c1_10, %c0_11, %c0_12] : memref<2x128x32xbf16, #tpu.memory_space<vmem>>, vector<1x128x32xbf16>
    %10 = vector.shape_cast %9 : vector<1x128x32xbf16> to vector<128x32xbf16>
    %cst_13 = arith.constant dense<0.000000e+00> : vector<128x32xf32>
    %11 = tpu.matmul %8, %10, %cst_13 {dimension_numbers = #tpu.dot_dimension_numbers<[1], [0], [0], [1], [0, 0, 1, 1], [], []>} : vector<128x128xbf16>, vector<128x32xbf16>, vector<128x32xf32> -> vector<128x32xf32>
    %12 = arith.addf %6, %11 : vector<128x32xf32>
    %cst_14 = arith.constant 0.00392156886 : f32
    %13 = vector.broadcast %cst_14 : f32 to vector<128x32xf32>
    %14 = arith.mulf %12, %13 : vector<128x32xf32>
    %c0_15 = arith.constant 0 : index
    %c0_16 = arith.constant 0 : index
    %15 = vector.load %arg3[%c0_15, %c0_16] : memref<1x32xf32, #tpu.memory_space<vmem>>, vector<1x32xf32>
    %16 = vector.broadcast %15 : vector<1x32xf32> to vector<128x32xf32>
    %17 = arith.addf %14, %16 : vector<128x32xf32>
    %cst_17 = arith.constant 0.000000e+00 : f32
    %18 = vector.broadcast %cst_17 : f32 to vector<128x32xf32>
    %19 = arith.maximumf %17, %18 : vector<128x32xf32>
    %20 = arith.truncf %19 : vector<128x32xf32> to vector<128x32xbf16>
    %21 = vector.shape_cast %20 : vector<128x32xbf16> to vector<2x8x8x32xbf16>
    %c0_18 = arith.constant 0 : index
    %c0_19 = arith.constant 0 : index
    %c0_20 = arith.constant 0 : index
    %c0_21 = arith.constant 0 : index
    %22 = vector.load %arg4[%c0_18, %c0_19, %c0_20, %c0_21] : memref<2x8x8x32xbf16, #tpu.memory_space<vmem>>, vector<2x8x8x32xbf16>
    tpu.vector_store %arg4[%c0_18, %c0_19, %c0_20, %c0_21], %21 {strides = array<i32>} : memref<2x8x8x32xbf16, #tpu.memory_space<vmem>>, vector<2x8x8x32xbf16>,
    return
  }
  func.func @transform_0(%arg0: i32) -> (i32, i32, i32, i32) {
    %c0_i32 = arith.constant 0 : i32
    %c0_i32_0 = arith.constant 0 : i32
    %c0_i32_1 = arith.constant 0 : i32
    %c0_i32_2 = arith.constant 0 : i32
    return %arg0, %c0_i32, %c0_i32_0, %c0_i32_1 : i32, i32, i32, i32
  }
  func.func @transform_1(%arg0: i32) -> (i32, i32, i32) {
    %c0_i32 = arith.constant 0 : i32
    %c0_i32_0 = arith.constant 0 : i32
    %c0_i32_1 = arith.constant 0 : i32
    %c0_i32_2 = arith.constant 0 : i32
    return %c0_i32, %c0_i32_0, %c0_i32_1 : i32, i32, i32
  }
  func.func @transform_2(%arg0: i32) -> (i32, i32) {
    %c0_i32 = arith.constant 0 : i32
    %c0_i32_0 = arith.constant 0 : i32
    %c0_i32_1 = arith.constant 0 : i32
    return %c0_i32, %c0_i32_0 : i32, i32
  }
  func.func @transform_3(%arg0: i32) -> (i32, i32, i32, i32) {
    %c0_i32 = arith.constant 0 : i32
    %c0_i32_0 = arith.constant 0 : i32
    %c0_i32_1 = arith.constant 0 : i32
    %c0_i32_2 = arith.constant 0 : i32
    return %arg0, %c0_i32, %c0_i32_0, %c0_i32_1 : i32, i32, i32, i32
  }
}

module attributes {stable_mosaic.version = 11 : i64} {
  func.func @_tail_kernel(%arg0: i32, %arg1: memref<9x2x512xbf16, #tpu.memory_space<vmem>>, %arg2: memref<512x64xbf16, #tpu.memory_space<vmem>>, %arg3: memref<1x64xf32, #tpu.memory_space<vmem>>, %arg4: memref<9x64x64xbf16, #tpu.memory_space<vmem>>, %arg5: memref<1x64xf32, #tpu.memory_space<vmem>>, %arg6: memref<64x128xbf16, #tpu.memory_space<vmem>>, %arg7: memref<1x128xf32, #tpu.memory_space<vmem>>, %arg8: memref<128x128xbf16, #tpu.memory_space<vmem>>, %arg9: memref<1x128xf32, #tpu.memory_space<vmem>>, %arg10: memref<2x128xf32, #tpu.memory_space<vmem>>, %arg11: memref<2x64xf32, #tpu.memory_space<vmem>>) attributes {dimension_semantics = [#tpu.dimension_semantics<parallel>], iteration_bounds = array<i64: 1>, scalar_prefetch = 0 : i64, scratch_operands = 0 : i64, tpu.core_type = #tpu.core_type<tc>, window_params = [{transform_indices = @transform_0, window_bounds = array<i64: 9, 2, 512>}, {pipeline_mode = #tpu.pipeline_mode<synchronous>, transform_indices = @transform_1, window_bounds = array<i64: 512, 64>}, {pipeline_mode = #tpu.pipeline_mode<synchronous>, transform_indices = @transform_2, window_bounds = array<i64: 1, 64>}, {pipeline_mode = #tpu.pipeline_mode<synchronous>, transform_indices = @transform_3, window_bounds = array<i64: 9, 64, 64>}, {pipeline_mode = #tpu.pipeline_mode<synchronous>, transform_indices = @transform_4, window_bounds = array<i64: 1, 64>}, {pipeline_mode = #tpu.pipeline_mode<synchronous>, transform_indices = @transform_5, window_bounds = array<i64: 64, 128>}, {pipeline_mode = #tpu.pipeline_mode<synchronous>, transform_indices = @transform_6, window_bounds = array<i64: 1, 128>}, {pipeline_mode = #tpu.pipeline_mode<synchronous>, transform_indices = @transform_7, window_bounds = array<i64: 128, 128>}, {pipeline_mode = #tpu.pipeline_mode<synchronous>, transform_indices = @transform_8, window_bounds = array<i64: 1, 128>}, {transform_indices = @transform_9, window_bounds = array<i64: 2, 128>}, {transform_indices = @transform_10, window_bounds = array<i64: 2, 64>}]} {
    %cst = arith.constant 0.000000e+00 : f32
    %0 = vector.broadcast %cst : f32 to vector<2x64xf32>
    %c0 = arith.constant 0 : index
    %c0_0 = arith.constant 0 : index
    %c0_1 = arith.constant 0 : index
    %1 = vector.load %arg1[%c0, %c0_0, %c0_1] : memref<9x2x512xbf16, #tpu.memory_space<vmem>>, vector<1x2x512xbf16>
    %2 = vector.shape_cast %1 : vector<1x2x512xbf16> to vector<2x512xbf16>
    %c0_2 = arith.constant 0 : index
    %c0_3 = arith.constant 0 : index
    %3 = vector.load %arg2[%c0_2, %c0_3] : memref<512x64xbf16, #tpu.memory_space<vmem>>, vector<512x64xbf16>
    %cst_4 = arith.constant dense<0.000000e+00> : vector<2x64xf32>
    %4 = tpu.matmul %2, %3, %cst_4 {dimension_numbers = #tpu.dot_dimension_numbers<[1], [0], [0], [1], [0, 0, 1, 1], [], []>} : vector<2x512xbf16>, vector<512x64xbf16>, vector<2x64xf32> -> vector<2x64xf32>
    %c0_5 = arith.constant 0 : index
    %c0_6 = arith.constant 0 : index
    %5 = vector.load %arg3[%c0_5, %c0_6] : memref<1x64xf32, #tpu.memory_space<vmem>>, vector<1x64xf32>
    %6 = vector.broadcast %5 : vector<1x64xf32> to vector<2x64xf32>
    %7 = arith.addf %4, %6 : vector<2x64xf32>
    %cst_7 = arith.constant 0.000000e+00 : f32
    %8 = vector.broadcast %cst_7 : f32 to vector<2x64xf32>
    %9 = arith.maximumf %7, %8 : vector<2x64xf32>
    %10 = arith.truncf %9 : vector<2x64xf32> to vector<2x64xbf16>
    %c0_8 = arith.constant 0 : index
    %c0_9 = arith.constant 0 : index
    %c0_10 = arith.constant 0 : index
    %11 = vector.load %arg4[%c0_8, %c0_9, %c0_10] : memref<9x64x64xbf16, #tpu.memory_space<vmem>>, vector<1x64x64xbf16>
    %12 = vector.shape_cast %11 : vector<1x64x64xbf16> to vector<64x64xbf16>
    %cst_11 = arith.constant dense<0.000000e+00> : vector<2x64xf32>
    %13 = tpu.matmul %10, %12, %cst_11 {dimension_numbers = #tpu.dot_dimension_numbers<[1], [0], [0], [1], [0, 0, 1, 1], [], []>} : vector<2x64xbf16>, vector<64x64xbf16>, vector<2x64xf32> -> vector<2x64xf32>
    %14 = arith.addf %0, %13 : vector<2x64xf32>
    %c1 = arith.constant 1 : index
    %c0_12 = arith.constant 0 : index
    %c0_13 = arith.constant 0 : index
    %15 = vector.load %arg1[%c1, %c0_12, %c0_13] : memref<9x2x512xbf16, #tpu.memory_space<vmem>>, vector<1x2x512xbf16>
    %16 = vector.shape_cast %15 : vector<1x2x512xbf16> to vector<2x512xbf16>
    %c0_14 = arith.constant 0 : index
    %c0_15 = arith.constant 0 : index
    %17 = vector.load %arg2[%c0_14, %c0_15] : memref<512x64xbf16, #tpu.memory_space<vmem>>, vector<512x64xbf16>
    %cst_16 = arith.constant dense<0.000000e+00> : vector<2x64xf32>
    %18 = tpu.matmul %16, %17, %cst_16 {dimension_numbers = #tpu.dot_dimension_numbers<[1], [0], [0], [1], [0, 0, 1, 1], [], []>} : vector<2x512xbf16>, vector<512x64xbf16>, vector<2x64xf32> -> vector<2x64xf32>
    %c0_17 = arith.constant 0 : index
    %c0_18 = arith.constant 0 : index
    %19 = vector.load %arg3[%c0_17, %c0_18] : memref<1x64xf32, #tpu.memory_space<vmem>>, vector<1x64xf32>
    %20 = vector.broadcast %19 : vector<1x64xf32> to vector<2x64xf32>
    %21 = arith.addf %18, %20 : vector<2x64xf32>
    %cst_19 = arith.constant 0.000000e+00 : f32
    %22 = vector.broadcast %cst_19 : f32 to vector<2x64xf32>
    %23 = arith.maximumf %21, %22 : vector<2x64xf32>
    %24 = arith.truncf %23 : vector<2x64xf32> to vector<2x64xbf16>
    %c1_20 = arith.constant 1 : index
    %c0_21 = arith.constant 0 : index
    %c0_22 = arith.constant 0 : index
    %25 = vector.load %arg4[%c1_20, %c0_21, %c0_22] : memref<9x64x64xbf16, #tpu.memory_space<vmem>>, vector<1x64x64xbf16>
    %26 = vector.shape_cast %25 : vector<1x64x64xbf16> to vector<64x64xbf16>
    %cst_23 = arith.constant dense<0.000000e+00> : vector<2x64xf32>
    %27 = tpu.matmul %24, %26, %cst_23 {dimension_numbers = #tpu.dot_dimension_numbers<[1], [0], [0], [1], [0, 0, 1, 1], [], []>} : vector<2x64xbf16>, vector<64x64xbf16>, vector<2x64xf32> -> vector<2x64xf32>
    %28 = arith.addf %14, %27 : vector<2x64xf32>
    %c2 = arith.constant 2 : index
    %c0_24 = arith.constant 0 : index
    %c0_25 = arith.constant 0 : index
    %29 = vector.load %arg1[%c2, %c0_24, %c0_25] : memref<9x2x512xbf16, #tpu.memory_space<vmem>>, vector<1x2x512xbf16>
    %30 = vector.shape_cast %29 : vector<1x2x512xbf16> to vector<2x512xbf16>
    %c0_26 = arith.constant 0 : index
    %c0_27 = arith.constant 0 : index
    %31 = vector.load %arg2[%c0_26, %c0_27] : memref<512x64xbf16, #tpu.memory_space<vmem>>, vector<512x64xbf16>
    %cst_28 = arith.constant dense<0.000000e+00> : vector<2x64xf32>
    %32 = tpu.matmul %30, %31, %cst_28 {dimension_numbers = #tpu.dot_dimension_numbers<[1], [0], [0], [1], [0, 0, 1, 1], [], []>} : vector<2x512xbf16>, vector<512x64xbf16>, vector<2x64xf32> -> vector<2x64xf32>
    %c0_29 = arith.constant 0 : index
    %c0_30 = arith.constant 0 : index
    %33 = vector.load %arg3[%c0_29, %c0_30] : memref<1x64xf32, #tpu.memory_space<vmem>>, vector<1x64xf32>
    %34 = vector.broadcast %33 : vector<1x64xf32> to vector<2x64xf32>
    %35 = arith.addf %32, %34 : vector<2x64xf32>
    %cst_31 = arith.constant 0.000000e+00 : f32
    %36 = vector.broadcast %cst_31 : f32 to vector<2x64xf32>
    %37 = arith.maximumf %35, %36 : vector<2x64xf32>
    %38 = arith.truncf %37 : vector<2x64xf32> to vector<2x64xbf16>
    %c2_32 = arith.constant 2 : index
    %c0_33 = arith.constant 0 : index
    %c0_34 = arith.constant 0 : index
    %39 = vector.load %arg4[%c2_32, %c0_33, %c0_34] : memref<9x64x64xbf16, #tpu.memory_space<vmem>>, vector<1x64x64xbf16>
    %40 = vector.shape_cast %39 : vector<1x64x64xbf16> to vector<64x64xbf16>
    %cst_35 = arith.constant dense<0.000000e+00> : vector<2x64xf32>
    %41 = tpu.matmul %38, %40, %cst_35 {dimension_numbers = #tpu.dot_dimension_numbers<[1], [0], [0], [1], [0, 0, 1, 1], [], []>} : vector<2x64xbf16>, vector<64x64xbf16>, vector<2x64xf32> -> vector<2x64xf32>
    %42 = arith.addf %28, %41 : vector<2x64xf32>
    %c3 = arith.constant 3 : index
    %c0_36 = arith.constant 0 : index
    %c0_37 = arith.constant 0 : index
    %43 = vector.load %arg1[%c3, %c0_36, %c0_37] : memref<9x2x512xbf16, #tpu.memory_space<vmem>>, vector<1x2x512xbf16>
    %44 = vector.shape_cast %43 : vector<1x2x512xbf16> to vector<2x512xbf16>
    %c0_38 = arith.constant 0 : index
    %c0_39 = arith.constant 0 : index
    %45 = vector.load %arg2[%c0_38, %c0_39] : memref<512x64xbf16, #tpu.memory_space<vmem>>, vector<512x64xbf16>
    %cst_40 = arith.constant dense<0.000000e+00> : vector<2x64xf32>
    %46 = tpu.matmul %44, %45, %cst_40 {dimension_numbers = #tpu.dot_dimension_numbers<[1], [0], [0], [1], [0, 0, 1, 1], [], []>} : vector<2x512xbf16>, vector<512x64xbf16>, vector<2x64xf32> -> vector<2x64xf32>
    %c0_41 = arith.constant 0 : index
    %c0_42 = arith.constant 0 : index
    %47 = vector.load %arg3[%c0_41, %c0_42] : memref<1x64xf32, #tpu.memory_space<vmem>>, vector<1x64xf32>
    %48 = vector.broadcast %47 : vector<1x64xf32> to vector<2x64xf32>
    %49 = arith.addf %46, %48 : vector<2x64xf32>
    %cst_43 = arith.constant 0.000000e+00 : f32
    %50 = vector.broadcast %cst_43 : f32 to vector<2x64xf32>
    %51 = arith.maximumf %49, %50 : vector<2x64xf32>
    %52 = arith.truncf %51 : vector<2x64xf32> to vector<2x64xbf16>
    %c3_44 = arith.constant 3 : index
    %c0_45 = arith.constant 0 : index
    %c0_46 = arith.constant 0 : index
    %53 = vector.load %arg4[%c3_44, %c0_45, %c0_46] : memref<9x64x64xbf16, #tpu.memory_space<vmem>>, vector<1x64x64xbf16>
    %54 = vector.shape_cast %53 : vector<1x64x64xbf16> to vector<64x64xbf16>
    %cst_47 = arith.constant dense<0.000000e+00> : vector<2x64xf32>
    %55 = tpu.matmul %52, %54, %cst_47 {dimension_numbers = #tpu.dot_dimension_numbers<[1], [0], [0], [1], [0, 0, 1, 1], [], []>} : vector<2x64xbf16>, vector<64x64xbf16>, vector<2x64xf32> -> vector<2x64xf32>
    %56 = arith.addf %42, %55 : vector<2x64xf32>
    %c4 = arith.constant 4 : index
    %c0_48 = arith.constant 0 : index
    %c0_49 = arith.constant 0 : index
    %57 = vector.load %arg1[%c4, %c0_48, %c0_49] : memref<9x2x512xbf16, #tpu.memory_space<vmem>>, vector<1x2x512xbf16>
    %58 = vector.shape_cast %57 : vector<1x2x512xbf16> to vector<2x512xbf16>
    %c0_50 = arith.constant 0 : index
    %c0_51 = arith.constant 0 : index
    %59 = vector.load %arg2[%c0_50, %c0_51] : memref<512x64xbf16, #tpu.memory_space<vmem>>, vector<512x64xbf16>
    %cst_52 = arith.constant dense<0.000000e+00> : vector<2x64xf32>
    %60 = tpu.matmul %58, %59, %cst_52 {dimension_numbers = #tpu.dot_dimension_numbers<[1], [0], [0], [1], [0, 0, 1, 1], [], []>} : vector<2x512xbf16>, vector<512x64xbf16>, vector<2x64xf32> -> vector<2x64xf32>
    %c0_53 = arith.constant 0 : index
    %c0_54 = arith.constant 0 : index
    %61 = vector.load %arg3[%c0_53, %c0_54] : memref<1x64xf32, #tpu.memory_space<vmem>>, vector<1x64xf32>
    %62 = vector.broadcast %61 : vector<1x64xf32> to vector<2x64xf32>
    %63 = arith.addf %60, %62 : vector<2x64xf32>
    %cst_55 = arith.constant 0.000000e+00 : f32
    %64 = vector.broadcast %cst_55 : f32 to vector<2x64xf32>
    %65 = arith.maximumf %63, %64 : vector<2x64xf32>
    %66 = arith.truncf %65 : vector<2x64xf32> to vector<2x64xbf16>
    %c4_56 = arith.constant 4 : index
    %c0_57 = arith.constant 0 : index
    %c0_58 = arith.constant 0 : index
    %67 = vector.load %arg4[%c4_56, %c0_57, %c0_58] : memref<9x64x64xbf16, #tpu.memory_space<vmem>>, vector<1x64x64xbf16>
    %68 = vector.shape_cast %67 : vector<1x64x64xbf16> to vector<64x64xbf16>
    %cst_59 = arith.constant dense<0.000000e+00> : vector<2x64xf32>
    %69 = tpu.matmul %66, %68, %cst_59 {dimension_numbers = #tpu.dot_dimension_numbers<[1], [0], [0], [1], [0, 0, 1, 1], [], []>} : vector<2x64xbf16>, vector<64x64xbf16>, vector<2x64xf32> -> vector<2x64xf32>
    %70 = arith.addf %56, %69 : vector<2x64xf32>
    %c5 = arith.constant 5 : index
    %c0_60 = arith.constant 0 : index
    %c0_61 = arith.constant 0 : index
    %71 = vector.load %arg1[%c5, %c0_60, %c0_61] : memref<9x2x512xbf16, #tpu.memory_space<vmem>>, vector<1x2x512xbf16>
    %72 = vector.shape_cast %71 : vector<1x2x512xbf16> to vector<2x512xbf16>
    %c0_62 = arith.constant 0 : index
    %c0_63 = arith.constant 0 : index
    %73 = vector.load %arg2[%c0_62, %c0_63] : memref<512x64xbf16, #tpu.memory_space<vmem>>, vector<512x64xbf16>
    %cst_64 = arith.constant dense<0.000000e+00> : vector<2x64xf32>
    %74 = tpu.matmul %72, %73, %cst_64 {dimension_numbers = #tpu.dot_dimension_numbers<[1], [0], [0], [1], [0, 0, 1, 1], [], []>} : vector<2x512xbf16>, vector<512x64xbf16>, vector<2x64xf32> -> vector<2x64xf32>
    %c0_65 = arith.constant 0 : index
    %c0_66 = arith.constant 0 : index
    %75 = vector.load %arg3[%c0_65, %c0_66] : memref<1x64xf32, #tpu.memory_space<vmem>>, vector<1x64xf32>
    %76 = vector.broadcast %75 : vector<1x64xf32> to vector<2x64xf32>
    %77 = arith.addf %74, %76 : vector<2x64xf32>
    %cst_67 = arith.constant 0.000000e+00 : f32
    %78 = vector.broadcast %cst_67 : f32 to vector<2x64xf32>
    %79 = arith.maximumf %77, %78 : vector<2x64xf32>
    %80 = arith.truncf %79 : vector<2x64xf32> to vector<2x64xbf16>
    %c5_68 = arith.constant 5 : index
    %c0_69 = arith.constant 0 : index
    %c0_70 = arith.constant 0 : index
    %81 = vector.load %arg4[%c5_68, %c0_69, %c0_70] : memref<9x64x64xbf16, #tpu.memory_space<vmem>>, vector<1x64x64xbf16>
    %82 = vector.shape_cast %81 : vector<1x64x64xbf16> to vector<64x64xbf16>
    %cst_71 = arith.constant dense<0.000000e+00> : vector<2x64xf32>
    %83 = tpu.matmul %80, %82, %cst_71 {dimension_numbers = #tpu.dot_dimension_numbers<[1], [0], [0], [1], [0, 0, 1, 1], [], []>} : vector<2x64xbf16>, vector<64x64xbf16>, vector<2x64xf32> -> vector<2x64xf32>
    %84 = arith.addf %70, %83 : vector<2x64xf32>
    %c6 = arith.constant 6 : index
    %c0_72 = arith.constant 0 : index
    %c0_73 = arith.constant 0 : index
    %85 = vector.load %arg1[%c6, %c0_72, %c0_73] : memref<9x2x512xbf16, #tpu.memory_space<vmem>>, vector<1x2x512xbf16>
    %86 = vector.shape_cast %85 : vector<1x2x512xbf16> to vector<2x512xbf16>
    %c0_74 = arith.constant 0 : index
    %c0_75 = arith.constant 0 : index
    %87 = vector.load %arg2[%c0_74, %c0_75] : memref<512x64xbf16, #tpu.memory_space<vmem>>, vector<512x64xbf16>
    %cst_76 = arith.constant dense<0.000000e+00> : vector<2x64xf32>
    %88 = tpu.matmul %86, %87, %cst_76 {dimension_numbers = #tpu.dot_dimension_numbers<[1], [0], [0], [1], [0, 0, 1, 1], [], []>} : vector<2x512xbf16>, vector<512x64xbf16>, vector<2x64xf32> -> vector<2x64xf32>
    %c0_77 = arith.constant 0 : index
    %c0_78 = arith.constant 0 : index
    %89 = vector.load %arg3[%c0_77, %c0_78] : memref<1x64xf32, #tpu.memory_space<vmem>>, vector<1x64xf32>
    %90 = vector.broadcast %89 : vector<1x64xf32> to vector<2x64xf32>
    %91 = arith.addf %88, %90 : vector<2x64xf32>
    %cst_79 = arith.constant 0.000000e+00 : f32
    %92 = vector.broadcast %cst_79 : f32 to vector<2x64xf32>
    %93 = arith.maximumf %91, %92 : vector<2x64xf32>
    %94 = arith.truncf %93 : vector<2x64xf32> to vector<2x64xbf16>
    %c6_80 = arith.constant 6 : index
    %c0_81 = arith.constant 0 : index
    %c0_82 = arith.constant 0 : index
    %95 = vector.load %arg4[%c6_80, %c0_81, %c0_82] : memref<9x64x64xbf16, #tpu.memory_space<vmem>>, vector<1x64x64xbf16>
    %96 = vector.shape_cast %95 : vector<1x64x64xbf16> to vector<64x64xbf16>
    %cst_83 = arith.constant dense<0.000000e+00> : vector<2x64xf32>
    %97 = tpu.matmul %94, %96, %cst_83 {dimension_numbers = #tpu.dot_dimension_numbers<[1], [0], [0], [1], [0, 0, 1, 1], [], []>} : vector<2x64xbf16>, vector<64x64xbf16>, vector<2x64xf32> -> vector<2x64xf32>
    %98 = arith.addf %84, %97 : vector<2x64xf32>
    %c7 = arith.constant 7 : index
    %c0_84 = arith.constant 0 : index
    %c0_85 = arith.constant 0 : index
    %99 = vector.load %arg1[%c7, %c0_84, %c0_85] : memref<9x2x512xbf16, #tpu.memory_space<vmem>>, vector<1x2x512xbf16>
    %100 = vector.shape_cast %99 : vector<1x2x512xbf16> to vector<2x512xbf16>
    %c0_86 = arith.constant 0 : index
    %c0_87 = arith.constant 0 : index
    %101 = vector.load %arg2[%c0_86, %c0_87] : memref<512x64xbf16, #tpu.memory_space<vmem>>, vector<512x64xbf16>
    %cst_88 = arith.constant dense<0.000000e+00> : vector<2x64xf32>
    %102 = tpu.matmul %100, %101, %cst_88 {dimension_numbers = #tpu.dot_dimension_numbers<[1], [0], [0], [1], [0, 0, 1, 1], [], []>} : vector<2x512xbf16>, vector<512x64xbf16>, vector<2x64xf32> -> vector<2x64xf32>
    %c0_89 = arith.constant 0 : index
    %c0_90 = arith.constant 0 : index
    %103 = vector.load %arg3[%c0_89, %c0_90] : memref<1x64xf32, #tpu.memory_space<vmem>>, vector<1x64xf32>
    %104 = vector.broadcast %103 : vector<1x64xf32> to vector<2x64xf32>
    %105 = arith.addf %102, %104 : vector<2x64xf32>
    %cst_91 = arith.constant 0.000000e+00 : f32
    %106 = vector.broadcast %cst_91 : f32 to vector<2x64xf32>
    %107 = arith.maximumf %105, %106 : vector<2x64xf32>
    %108 = arith.truncf %107 : vector<2x64xf32> to vector<2x64xbf16>
    %c7_92 = arith.constant 7 : index
    %c0_93 = arith.constant 0 : index
    %c0_94 = arith.constant 0 : index
    %109 = vector.load %arg4[%c7_92, %c0_93, %c0_94] : memref<9x64x64xbf16, #tpu.memory_space<vmem>>, vector<1x64x64xbf16>
    %110 = vector.shape_cast %109 : vector<1x64x64xbf16> to vector<64x64xbf16>
    %cst_95 = arith.constant dense<0.000000e+00> : vector<2x64xf32>
    %111 = tpu.matmul %108, %110, %cst_95 {dimension_numbers = #tpu.dot_dimension_numbers<[1], [0], [0], [1], [0, 0, 1, 1], [], []>} : vector<2x64xbf16>, vector<64x64xbf16>, vector<2x64xf32> -> vector<2x64xf32>
    %112 = arith.addf %98, %111 : vector<2x64xf32>
    %c8 = arith.constant 8 : index
    %c0_96 = arith.constant 0 : index
    %c0_97 = arith.constant 0 : index
    %113 = vector.load %arg1[%c8, %c0_96, %c0_97] : memref<9x2x512xbf16, #tpu.memory_space<vmem>>, vector<1x2x512xbf16>
    %114 = vector.shape_cast %113 : vector<1x2x512xbf16> to vector<2x512xbf16>
    %c0_98 = arith.constant 0 : index
    %c0_99 = arith.constant 0 : index
    %115 = vector.load %arg2[%c0_98, %c0_99] : memref<512x64xbf16, #tpu.memory_space<vmem>>, vector<512x64xbf16>
    %cst_100 = arith.constant dense<0.000000e+00> : vector<2x64xf32>
    %116 = tpu.matmul %114, %115, %cst_100 {dimension_numbers = #tpu.dot_dimension_numbers<[1], [0], [0], [1], [0, 0, 1, 1], [], []>} : vector<2x512xbf16>, vector<512x64xbf16>, vector<2x64xf32> -> vector<2x64xf32>
    %c0_101 = arith.constant 0 : index
    %c0_102 = arith.constant 0 : index
    %117 = vector.load %arg3[%c0_101, %c0_102] : memref<1x64xf32, #tpu.memory_space<vmem>>, vector<1x64xf32>
    %118 = vector.broadcast %117 : vector<1x64xf32> to vector<2x64xf32>
    %119 = arith.addf %116, %118 : vector<2x64xf32>
    %cst_103 = arith.constant 0.000000e+00 : f32
    %120 = vector.broadcast %cst_103 : f32 to vector<2x64xf32>
    %121 = arith.maximumf %119, %120 : vector<2x64xf32>
    %122 = arith.truncf %121 : vector<2x64xf32> to vector<2x64xbf16>
    %c8_104 = arith.constant 8 : index
    %c0_105 = arith.constant 0 : index
    %c0_106 = arith.constant 0 : index
    %123 = vector.load %arg4[%c8_104, %c0_105, %c0_106] : memref<9x64x64xbf16, #tpu.memory_space<vmem>>, vector<1x64x64xbf16>
    %124 = vector.shape_cast %123 : vector<1x64x64xbf16> to vector<64x64xbf16>
    %cst_107 = arith.constant dense<0.000000e+00> : vector<2x64xf32>
    %125 = tpu.matmul %122, %124, %cst_107 {dimension_numbers = #tpu.dot_dimension_numbers<[1], [0], [0], [1], [0, 0, 1, 1], [], []>} : vector<2x64xbf16>, vector<64x64xbf16>, vector<2x64xf32> -> vector<2x64xf32>
    %126 = arith.addf %112, %125 : vector<2x64xf32>
    %c0_108 = arith.constant 0 : index
    %c0_109 = arith.constant 0 : index
    %127 = vector.load %arg5[%c0_108, %c0_109] : memref<1x64xf32, #tpu.memory_space<vmem>>, vector<1x64xf32>
    %128 = vector.broadcast %127 : vector<1x64xf32> to vector<2x64xf32>
    %129 = arith.addf %126, %128 : vector<2x64xf32>
    %cst_110 = arith.constant 0.000000e+00 : f32
    %130 = vector.broadcast %cst_110 : f32 to vector<2x64xf32>
    %131 = arith.maximumf %129, %130 : vector<2x64xf32>
    %c0_111 = arith.constant 0 : index
    %c0_112 = arith.constant 0 : index
    %132 = vector.load %arg11[%c0_111, %c0_112] : memref<2x64xf32, #tpu.memory_space<vmem>>, vector<2x64xf32>
    tpu.vector_store %arg11[%c0_111, %c0_112], %131 {strides = array<i32>} : memref<2x64xf32, #tpu.memory_space<vmem>>, vector<2x64xf32>,
    %133 = arith.truncf %131 : vector<2x64xf32> to vector<2x64xbf16>
    %c0_113 = arith.constant 0 : index
    %c0_114 = arith.constant 0 : index
    %134 = vector.load %arg6[%c0_113, %c0_114] : memref<64x128xbf16, #tpu.memory_space<vmem>>, vector<64x128xbf16>
    %cst_115 = arith.constant dense<0.000000e+00> : vector<2x128xf32>
    %135 = tpu.matmul %133, %134, %cst_115 {dimension_numbers = #tpu.dot_dimension_numbers<[1], [0], [0], [1], [0, 0, 1, 1], [], []>} : vector<2x64xbf16>, vector<64x128xbf16>, vector<2x128xf32> -> vector<2x128xf32>
    %c0_116 = arith.constant 0 : index
    %c0_117 = arith.constant 0 : index
    %136 = vector.load %arg7[%c0_116, %c0_117] : memref<1x128xf32, #tpu.memory_space<vmem>>, vector<1x128xf32>
    %137 = vector.broadcast %136 : vector<1x128xf32> to vector<2x128xf32>
    %138 = arith.addf %135, %137 : vector<2x128xf32>
    %cst_118 = arith.constant 0.000000e+00 : f32
    %139 = vector.broadcast %cst_118 : f32 to vector<2x128xf32>
    %140 = arith.maximumf %138, %139 : vector<2x128xf32>
    %141 = arith.truncf %140 : vector<2x128xf32> to vector<2x128xbf16>
    %c0_119 = arith.constant 0 : index
    %c0_120 = arith.constant 0 : index
    %142 = vector.load %arg8[%c0_119, %c0_120] : memref<128x128xbf16, #tpu.memory_space<vmem>>, vector<128x128xbf16>
    %cst_121 = arith.constant dense<0.000000e+00> : vector<2x128xf32>
    %143 = tpu.matmul %141, %142, %cst_121 {dimension_numbers = #tpu.dot_dimension_numbers<[1], [0], [0], [1], [0, 0, 1, 1], [], []>} : vector<2x128xbf16>, vector<128x128xbf16>, vector<2x128xf32> -> vector<2x128xf32>
    %c0_122 = arith.constant 0 : index
    %c0_123 = arith.constant 0 : index
    %144 = vector.load %arg9[%c0_122, %c0_123] : memref<1x128xf32, #tpu.memory_space<vmem>>, vector<1x128xf32>
    %145 = vector.broadcast %144 : vector<1x128xf32> to vector<2x128xf32>
    %146 = arith.addf %143, %145 : vector<2x128xf32>
    %147 = tpu.iota {dimensions = array<i32: 1>} : vector<2x128xi32>
    %c6_i32 = arith.constant 6 : i32
    %148 = vector.broadcast %c6_i32 : i32 to vector<2x128xi32>
    %149 = arith.cmpi slt, %147, %148 : vector<2x128xi32>
    %cst_124 = arith.constant -1.000000e+30 : f32
    %150 = vector.broadcast %cst_124 : f32 to vector<2x128xf32>
    %151 = arith.select %149, %146, %150 : vector<2x128xi1>, vector<2x128xf32>
    %cst_125 = arith.constant dense<0xFF800000> : vector<2xf32>
    %152 = vector.multi_reduction <maximumf>, %151, %cst_125 [1] : vector<2x128xf32> to vector<2xf32>
    %153 = vector.shape_cast %152 : vector<2xf32> to vector<2x1xf32>
    %154 = vector.broadcast %153 : vector<2x1xf32> to vector<2x128xf32>
    %155 = arith.subf %151, %154 : vector<2x128xf32>
    %156 = math.exp %155 : vector<2x128xf32>
    %cst_126 = arith.constant 0.000000e+00 : f32
    %157 = vector.broadcast %cst_126 : f32 to vector<2x128xf32>
    %158 = arith.select %149, %156, %157 : vector<2x128xi1>, vector<2x128xf32>
    %cst_127 = arith.constant dense<0.000000e+00> : vector<2xf32>
    %159 = vector.multi_reduction <add>, %158, %cst_127 [1] : vector<2x128xf32> to vector<2xf32>
    %160 = vector.shape_cast %159 : vector<2xf32> to vector<2x1xf32>
    %161 = vector.broadcast %160 : vector<2x1xf32> to vector<2x128xf32>
    %162 = arith.divf %158, %161 : vector<2x128xf32>
    %c6_i32_128 = arith.constant 6 : i32
    %163 = vector.broadcast %c6_i32_128 : i32 to vector<2x128xi32>
    %164 = arith.cmpi eq, %147, %163 : vector<2x128xi32>
    %cst_129 = arith.constant 0.000000e+00 : f32
    %165 = vector.broadcast %cst_129 : f32 to vector<2x128xf32>
    %166 = arith.select %164, %146, %165 : vector<2x128xi1>, vector<2x128xf32>
    %167 = arith.select %149, %162, %166 : vector<2x128xi1>, vector<2x128xf32>
    %c0_130 = arith.constant 0 : index
    %c0_131 = arith.constant 0 : index
    %168 = vector.load %arg10[%c0_130, %c0_131] : memref<2x128xf32, #tpu.memory_space<vmem>>, vector<2x128xf32>
    tpu.vector_store %arg10[%c0_130, %c0_131], %167 {strides = array<i32>} : memref<2x128xf32, #tpu.memory_space<vmem>>, vector<2x128xf32>,
    return
  }
  func.func @transform_0(%arg0: i32) -> (i32, i32, i32) {
    %c0_i32 = arith.constant 0 : i32
    %c0_i32_0 = arith.constant 0 : i32
    %c0_i32_1 = arith.constant 0 : i32
    return %c0_i32, %arg0, %c0_i32_0 : i32, i32, i32
  }
  func.func @transform_1(%arg0: i32) -> (i32, i32) {
    %c0_i32 = arith.constant 0 : i32
    %c0_i32_0 = arith.constant 0 : i32
    %c0_i32_1 = arith.constant 0 : i32
    return %c0_i32, %c0_i32_0 : i32, i32
  }
  func.func @transform_2(%arg0: i32) -> (i32, i32) {
    %c0_i32 = arith.constant 0 : i32
    %c0_i32_0 = arith.constant 0 : i32
    %c0_i32_1 = arith.constant 0 : i32
    return %c0_i32, %c0_i32_0 : i32, i32
  }
  func.func @transform_3(%arg0: i32) -> (i32, i32, i32) {
    %c0_i32 = arith.constant 0 : i32
    %c0_i32_0 = arith.constant 0 : i32
    %c0_i32_1 = arith.constant 0 : i32
    %c0_i32_2 = arith.constant 0 : i32
    return %c0_i32, %c0_i32_0, %c0_i32_1 : i32, i32, i32
  }
  func.func @transform_4(%arg0: i32) -> (i32, i32) {
    %c0_i32 = arith.constant 0 : i32
    %c0_i32_0 = arith.constant 0 : i32
    %c0_i32_1 = arith.constant 0 : i32
    return %c0_i32, %c0_i32_0 : i32, i32
  }
  func.func @transform_5(%arg0: i32) -> (i32, i32) {
    %c0_i32 = arith.constant 0 : i32
    %c0_i32_0 = arith.constant 0 : i32
    %c0_i32_1 = arith.constant 0 : i32
    return %c0_i32, %c0_i32_0 : i32, i32
  }
  func.func @transform_6(%arg0: i32) -> (i32, i32) {
    %c0_i32 = arith.constant 0 : i32
    %c0_i32_0 = arith.constant 0 : i32
    %c0_i32_1 = arith.constant 0 : i32
    return %c0_i32, %c0_i32_0 : i32, i32
  }
  func.func @transform_7(%arg0: i32) -> (i32, i32) {
    %c0_i32 = arith.constant 0 : i32
    %c0_i32_0 = arith.constant 0 : i32
    %c0_i32_1 = arith.constant 0 : i32
    return %c0_i32, %c0_i32_0 : i32, i32
  }
  func.func @transform_8(%arg0: i32) -> (i32, i32) {
    %c0_i32 = arith.constant 0 : i32
    %c0_i32_0 = arith.constant 0 : i32
    %c0_i32_1 = arith.constant 0 : i32
    return %c0_i32, %c0_i32_0 : i32, i32
  }
  func.func @transform_9(%arg0: i32) -> (i32, i32) {
    %c0_i32 = arith.constant 0 : i32
    %c0_i32_0 = arith.constant 0 : i32
    return %arg0, %c0_i32 : i32, i32
  }
  func.func @transform_10(%arg0: i32) -> (i32, i32) {
    %c0_i32 = arith.constant 0 : i32
    %c0_i32_0 = arith.constant 0 : i32
    return %arg0, %c0_i32 : i32, i32
  }
}

</mosaic_0001>

<bundles_post_ra>
// kernel: _lambda_.2
= control target key start
LH: loop header
LB: loop body
LE: loop exit
PB: predicated region body
PF: predicated region fallthrough
CT: control target
= control target key end

     0   :  { %vm586_vm0 = vcmask 257024   ;;  %s1049_s1 = inlined_call_operand.vmem [shape: bf16[2,128,32], index: 1, kind: input, shape index: {}]   ;;  %s1050_s0 = inlined_call_operand.vmem [shape: bf16[2,9,8,128], index: 0, kind: input, shape index: {}]   ;;  %s1051_s2 = inlined_call_operand.vmem [shape: f32[1,32], index: 2, kind: input, shape index: {}]   ;;  %s1052_s3 = inlined_call_operand.vmem [shape: bf16[2,8,8,32], index: 3, kind: output, shape index: {}]  }
   0x1   :  { %v816_v0 = vld [vmem:[%s1049_s1 + $0x40] sm:$0xff]   ;;  %v818_v2 = vld [vmem:[%s1049_s1 + $0x48] sm:$0xff]   ;;  %v820_v4 = vld [vmem:[%s1049_s1 + $0x50] sm:$0xff]  }
   0x2   :  { %v817_v1 = vld [vmem:[%s1049_s1] sm:$0xff]   ;;  %736 = vmatprep.subr.bf16.mxu1 %v816_v0  ;;  %v819_v3 = vld [vmem:[%s1049_s1 + $0x8] sm:$0xff]   ;;  %v821_v5 = vld [vmem:[%s1049_s1 + $0x10] sm:$0xff]  }
   0x3   :  { %768 = vmatprep.subr.bf16.mxu0 %v817_v1  ;;  %737 = vmatpush3.bf16.msra.mxu1 %v816_v0  ;;  %v822_v6 = vld [vmem:[%s1049_s1 + $0x58] sm:$0xff]   ;;  %v824_v8 = vld [vmem:[%s1049_s1 + $0x60] sm:$0xff]   ;;  %v826_v10 = vld [vmem:[%s1049_s1 + $0x68] sm:$0xff]  }
   0x4   :  { %769 = vmatpush3.bf16.msra.mxu0 %v817_v1  ;;  %738 = vmatprep.subr.bf16.mxu1 %v818_v2  ;;  %v823_v7 = vld [vmem:[%s1049_s1 + $0x18] sm:$0xff]   ;;  %v825_v9 = vld [vmem:[%s1049_s1 + $0x20] sm:$0xff]   ;;  %v827_v11 = vld [vmem:[%s1049_s1 + $0x28] sm:$0xff]  }
   0x5   :  { %770 = vmatprep.subr.bf16.mxu0 %v819_v3  ;;  %v832_v12 = vld [vmem:[%s1050_s0 + $0x4] sm:$0xff]   ;;  %v828_v14 = vld [vmem:[%s1049_s1 + $0x70] sm:$0xff]   ;;  %v830_v16 = vld [vmem:[%s1049_s1 + $0x78] sm:$0xff]  }
   0x6   :  { %v833_v13 = vld [vmem:[%s1050_s0] sm:$0xff]   ;;  %752 = vmatprep.mubr.bf16.mxu1 %v832_v12  ;;  %v829_v15 = vld [vmem:[%s1049_s1 + $0x30] sm:$0xff]   ;;  %v831_v17 = vld [vmem:[%s1049_s1 + $0x38] sm:$0xff]  }
   0x7   :  { %739 = vmatpush3.bf16.msra.mxu1 %v818_v2  ;;  %784 = vmatprep.mubr.bf16.mxu0 %v833_v13  ;;  %v834_v18 = vld [vmem:[%s1050_s0 + $0xc] sm:$0xff]   ;;  %v836_v20 = vld [vmem:[%s1050_s0 + $0x14] sm:$0xff]   ;;  %v838_v22 = vld [vmem:[%s1050_s0 + $0x1c] sm:$0xff]  }
   0x8   :  { %771 = vmatpush3.bf16.msra.mxu0 %v819_v3  ;;  %740 = vmatprep.subr.bf16.mxu1 %v820_v4  ;;  %v835_v19 = vld [vmem:[%s1050_s0 + $0x8] sm:$0xff]   ;;  %v837_v21 = vld [vmem:[%s1050_s0 + $0x10] sm:$0xff]   ;;  %v839_v23 = vld [vmem:[%s1050_s0 + $0x18] sm:$0xff]  }
   0x9   :  { %772 = vmatprep.subr.bf16.mxu0 %v821_v5  ;;  %v840_v24 = vld [vmem:[%s1050_s0 + $0x28] sm:$0xff]   ;;  %v842_v26 = vld [vmem:[%s1050_s0 + $0x30] sm:$0xff]   ;;  %v844_v28 = vld [vmem:[%s1050_s0 + $0x38] sm:$0xff]  }
   0xa   :  { %v841_v25 = vld [vmem:[%s1050_s0 + $0x24] sm:$0xff]   ;;  %v843_v27 = vld [vmem:[%s1050_s0 + $0x2c] sm:$0xff]   ;;  %v845_v29 = vld [vmem:[%s1050_s0 + $0x34] sm:$0xff]  }
   0xb   :  { %741 = vmatpush3.bf16.msra.mxu1 %v820_v4  ;;  %v846_v30 = vld [vmem:[%s1050_s0 + $0x40] sm:$0xff]  }
   0xc   :  { %773 = vmatpush3.bf16.msra.mxu0 %v821_v5  ;;  %742 = vmatprep.subr.bf16.mxu1 %v822_v6  ;;  %v847_v31 = vld [vmem:[%s1050_s0 + $0x3c] sm:$0xff]  }
   0xd   :  { %774 = vmatprep.subr.bf16.mxu0 %v823_v7  ;;  %v967_v38 = vld [vmem:[%s1051_s2] ss:$0 sm:$0xff] }
   0xf   :  { %743 = vmatpush3.bf16.msra.mxu1 %v822_v6 }
  0x10   :  { %775 = vmatpush3.bf16.msra.mxu0 %v823_v7  ;;  %744 = vmatprep.subr.bf16.mxu1 %v824_v8 }
  0x11   :  { %776 = vmatprep.subr.bf16.mxu0 %v825_v9 }
  0x13   :  { %745 = vmatpush3.bf16.msra.mxu1 %v824_v8 }
  0x14   :  { %777 = vmatpush3.bf16.msra.mxu0 %v825_v9  ;;  %746 = vmatprep.subr.bf16.mxu1 %v826_v10 }
  0x15   :  { %778 = vmatprep.subr.bf16.mxu0 %v827_v11 }
  0x17   :  { %747 = vmatpush3.bf16.msra.mxu1 %v826_v10 }
  0x18   :  { %779 = vmatpush3.bf16.msra.mxu0 %v827_v11  ;;  %748 = vmatprep.subr.bf16.mxu1 %v828_v14 }
  0x19   :  { %780 = vmatprep.subr.bf16.mxu0 %v829_v15 }
  0x1b   :  { %749 = vmatpush3.bf16.msra.mxu1 %v828_v14 }
  0x1c   :  { %781 = vmatpush3.bf16.msra.mxu0 %v829_v15  ;;  %750 = vmatprep.subr.bf16.mxu1 %v830_v16 }
  0x1d   :  { %782 = vmatprep.subr.bf16.mxu0 %v831_v17 }
  0x1f   :  { %751 = vmatpush3.bf16.msra.mxu1 %v830_v16 }
  0x20   :  { %783 = vmatpush3.bf16.msra.mxu0 %v831_v17 }
  0x22   :  { %753 = vmatmul.mubr.bf16.vlgmr.msra.gmra.mrb[0].mxu1 %v834_v18 }
  0x23   :  { %785 = vmatmul.mubr.bf16.vlgmr.msra.gmra.mrb[0].mxu0 %v835_v19  ;;  %756 = vmatprep.mubr.bf16.mxu1 %v836_v20 }
  0x24   :  { %788 = vmatprep.mubr.bf16.mxu0 %v837_v21 }
  0x2a   :  { %757 = vmatmul.mubr.bf16.gmra.mrb[4].mxu1 %v838_v22 }
  0x2b   :  { %789 = vmatmul.mubr.bf16.gmra.mrb[4].mxu0 %v839_v23  ;;  %760 = vmatprep.mubr.bf16.mxu1 %v840_v24 }
  0x2c   :  { %792 = vmatprep.mubr.bf16.mxu0 %v841_v25 }
  0x32   :  { %761 = vmatmul.mubr.bf16.gmra.mrb[8].mxu1 %v842_v26 }
  0x33   :  { %793 = vmatmul.mubr.bf16.gmra.mrb[8].mxu0 %v843_v27  ;;  %764 = vmatprep.mubr.bf16.mxu1 %v844_v28 }
  0x34   :  { %796 = vmatprep.mubr.bf16.mxu0 %v845_v29 }
  0x3a   :  { %765 = vmatmul.mubr.bf16.gmra.mrb[12].mxu1 %v846_v30 }
  0x3b   :  { %797 = vmatmul.mubr.bf16.gmra.mrb[12].mxu0 %v847_v31 }
  0xf5   :  { %v754_v32 = vpop.f32.mrb[0].mxu1 }
  0xf6   :  { %v786_v33 = vpop.f32.mrb[0].mxu0  ;;  %v211_v34 = vpop.f32.mrb[1].mxu1 }
  0xf7   :  { %v413_v35 = vadd.f32 %v786_v33, %v754_v32  ;;  %v404_v36 = vpop.f32.mrb[1].mxu0  ;;  %v755_v37 = vpop.f32.mrb[2].mxu1 }
  0xf8   :  { %v405_v39 = vadd.f32 %v404_v36, %v211_v34  ;;  %v787_v40 = vpop.f32.mrb[2].mxu0  ;;  %v214_v41 = vpop.f32.mrb[3].mxu1 }
  0xf9   :  { %v469_v42 = vmul.f32 0.003921569, %v413_v35  ;;  %v416_v43 = vadd.f32 %v787_v40, %v755_v37  ;;  %v407_v44 = vpop.f32.mrb[3].mxu0 }
  0xfa   :  { %v467_v45 = vmul.f32 0.003921569, %v405_v39  ;;  %v408_v46 = vadd.f32 %v407_v44, %v214_v41 }
  0xfb   :  { %v492_v47 = vadd.f32 %v967_v38, %v469_v42  ;;  %v470_v48 = vmul.f32 0.003921569, %v416_v43 }
  0xfc   :  { %v490_v49 = vadd.f32 %v967_v38, %v467_v45  ;;  %v468_v50 = vmul.f32 0.003921569, %v408_v46 }
  0xfd   :  { %v508_v51 = vmax.f32 %v492_v47, 0.0  ;;  %v493_v52 = vadd.f32 %v967_v38, %v470_v48  ;;  %v758_v53 = vpop.f32.mrb[4].mxu1 }
  0xfe   :  { %v506_v54 = vmax.f32 %v490_v49, 0.0  ;;  %v491_v55 = vadd.f32 %v967_v38, %v468_v50  ;;  %v790_v56 = vpop.f32.mrb[4].mxu0  ;;  %v227_v57 = vpop.f32.mrb[5].mxu1 }
  0xff   :  { %v690_v58 = vpack.c.bf16 %v508_v51, %v508_v51  ;;  %v509_v59 = vmax.f32 %v493_v52, 0.0  ;;  %v429_v60 = vadd.f32 %v790_v56, %v758_v53  ;;  %v420_v61 = vpop.f32.mrb[5].mxu0  ;;  %v759_v62 = vpop.f32.mrb[6].mxu1 }
 0x100   :  { %v688_v63 = vpack.c.bf16 %v506_v54, %v506_v54  ;;  %v507_v0 = vmax.f32 %v491_v55, 0.0  ;;  %v421_v1 = vadd.f32 %v420_v61, %v227_v57  ;;  %v791_v2 = vpop.f32.mrb[6].mxu0  ;;  %v230_v3 = vpop.f32.mrb[7].mxu1 }
 0x101   :  { %589 = vst.msk [vmem:[%s1052_s3 + $0x8] sm:$0xf] %vm586_vm0, %v690_v58  ;;  %v691_v4 = vpack.c.bf16 %v509_v59, %v509_v59  ;;  %v473_v5 = vmul.f32 0.003921569, %v429_v60  ;;  %v432_v6 = vadd.f32 %v791_v2, %v759_v62  ;;  %v423_v7 = vpop.f32.mrb[7].mxu0 }
 0x102   :  { %587 = vst.msk [vmem:[%s1052_s3] sm:$0xf] %vm586_vm0, %v688_v63  ;;  %v689_v8 = vpack.c.bf16 %v507_v0, %v507_v0  ;;  %v471_v9 = vmul.f32 0.003921569, %v421_v1  ;;  %v424_v10 = vadd.f32 %v423_v7, %v230_v3 }
 0x103   :  { %590 = vst.msk [vmem:[%s1052_s3 + $0xc] sm:$0xf] %vm586_vm0, %v691_v4  ;;  %v496_v11 = vadd.f32 %v967_v38, %v473_v5  ;;  %v474_v12 = vmul.f32 0.003921569, %v432_v6 }
 0x104   :  { %588 = vst.msk [vmem:[%s1052_s3 + $0x4] sm:$0xf] %vm586_vm0, %v689_v8  ;;  %v494_v13 = vadd.f32 %v967_v38, %v471_v9  ;;  %v472_v14 = vmul.f32 0.003921569, %v424_v10 }
 0x105   :  { %v512_v15 = vmax.f32 %v496_v11, 0.0  ;;  %v497_v16 = vadd.f32 %v967_v38, %v474_v12  ;;  %v762_v17 = vpop.f32.mrb[8].mxu1 }
 0x106   :  { %v510_v18 = vmax.f32 %v494_v13, 0.0  ;;  %v495_v19 = vadd.f32 %v967_v38, %v472_v14  ;;  %v794_v20 = vpop.f32.mrb[8].mxu0  ;;  %v243_v21 = vpop.f32.mrb[9].mxu1 }
 0x107   :  { %v694_v22 = vpack.c.bf16 %v512_v15, %v512_v15  ;;  %v513_v23 = vmax.f32 %v497_v16, 0.0  ;;  %v445_v24 = vadd.f32 %v794_v20, %v762_v17  ;;  %v436_v25 = vpop.f32.mrb[9].mxu0  ;;  %v763_v26 = vpop.f32.mrb[10].mxu1 }
 0x108   :  { %v692_v27 = vpack.c.bf16 %v510_v18, %v510_v18  ;;  %v511_v28 = vmax.f32 %v495_v19, 0.0  ;;  %v437_v29 = vadd.f32 %v436_v25, %v243_v21  ;;  %v795_v30 = vpop.f32.mrb[10].mxu0  ;;  %v246_v31 = vpop.f32.mrb[11].mxu1 }
 0x109   :  { %593 = vst.msk [vmem:[%s1052_s3 + $0x18] sm:$0xf] %vm586_vm0, %v694_v22  ;;  %v695_v32 = vpack.c.bf16 %v513_v23, %v513_v23  ;;  %v477_v33 = vmul.f32 0.003921569, %v445_v24  ;;  %v448_v34 = vadd.f32 %v795_v30, %v763_v26  ;;  %v439_v35 = vpop.f32.mrb[11].mxu0 }
 0x10a   :  { %591 = vst.msk [vmem:[%s1052_s3 + $0x10] sm:$0xf] %vm586_vm0, %v692_v27  ;;  %v693_v36 = vpack.c.bf16 %v511_v28, %v511_v28  ;;  %v475_v37 = vmul.f32 0.003921569, %v437_v29  ;;  %v440_v39 = vadd.f32 %v439_v35, %v246_v31 }
 0x10b   :  { %594 = vst.msk [vmem:[%s1052_s3 + $0x1c] sm:$0xf] %vm586_vm0, %v695_v32  ;;  %v500_v40 = vadd.f32 %v967_v38, %v477_v33  ;;  %v478_v41 = vmul.f32 0.003921569, %v448_v34 }
 0x10c   :  { %592 = vst.msk [vmem:[%s1052_s3 + $0x14] sm:$0xf] %vm586_vm0, %v693_v36  ;;  %v498_v42 = vadd.f32 %v967_v38, %v475_v37  ;;  %v476_v43 = vmul.f32 0.003921569, %v440_v39 }
 0x10d   :  { %v516_v44 = vmax.f32 %v500_v40, 0.0  ;;  %v501_v45 = vadd.f32 %v967_v38, %v478_v41  ;;  %v766_v46 = vpop.f32.mrb[12].mxu1 }
 0x10e   :  { %v514_v47 = vmax.f32 %v498_v42, 0.0  ;;  %v499_v48 = vadd.f32 %v967_v38, %v476_v43  ;;  %v798_v49 = vpop.f32.mrb[12].mxu0  ;;  %v259_v50 = vpop.f32.mrb[13].mxu1 }
 0x10f   :  { %v698_v51 = vpack.c.bf16 %v516_v44, %v516_v44  ;;  %v517_v52 = vmax.f32 %v501_v45, 0.0  ;;  %v461_v53 = vadd.f32 %v798_v49, %v766_v46  ;;  %v452_v54 = vpop.f32.mrb[13].mxu0  ;;  %v767_v55 = vpop.f32.mrb[14].mxu1 }
 0x110   :  { %v696_v56 = vpack.c.bf16 %v514_v47, %v514_v47  ;;  %v515_v57 = vmax.f32 %v499_v48, 0.0  ;;  %v453_v58 = vadd.f32 %v452_v54, %v259_v50  ;;  %v799_v59 = vpop.f32.mrb[14].mxu0  ;;  %v262_v60 = vpop.f32.mrb[15].mxu1 }
 0x111   :  { %597 = vst.msk [vmem:[%s1052_s3 + $0x28] sm:$0xf] %vm586_vm0, %v698_v51  ;;  %v699_v61 = vpack.c.bf16 %v517_v52, %v517_v52  ;;  %v481_v62 = vmul.f32 0.003921569, %v461_v53  ;;  %v464_v63 = vadd.f32 %v799_v59, %v767_v55  ;;  %v455_v0 = vpop.f32.mrb[15].mxu0 }
 0x112   :  { %595 = vst.msk [vmem:[%s1052_s3 + $0x20] sm:$0xf] %vm586_vm0, %v696_v56  ;;  %v697_v1 = vpack.c.bf16 %v515_v57, %v515_v57  ;;  %v479_v2 = vmul.f32 0.003921569, %v453_v58  ;;  %v456_v3 = vadd.f32 %v455_v0, %v262_v60 }
 0x113   :  { %598 = vst.msk [vmem:[%s1052_s3 + $0x2c] sm:$0xf] %vm586_vm0, %v699_v61  ;;  %v504_v4 = vadd.f32 %v967_v38, %v481_v62  ;;  %v482_v5 = vmul.f32 0.003921569, %v464_v63 }
 0x114   :  { %596 = vst.msk [vmem:[%s1052_s3 + $0x24] sm:$0xf] %vm586_vm0, %v697_v1  ;;  %v502_v6 = vadd.f32 %v967_v38, %v479_v2  ;;  %v480_v7 = vmul.f32 0.003921569, %v456_v3 }
 0x115   :  { %v520_v8 = vmax.f32 %v504_v4, 0.0  ;;  %v505_v9 = vadd.f32 %v967_v38, %v482_v5 }
 0x116   :  { %v518_v10 = vmax.f32 %v502_v6, 0.0  ;;  %v503_v11 = vadd.f32 %v967_v38, %v480_v7 }
 0x117   :  { %v702_v12 = vpack.c.bf16 %v520_v8, %v520_v8  ;;  %v521_v13 = vmax.f32 %v505_v9, 0.0 }
 0x118   :  { %v700_v14 = vpack.c.bf16 %v518_v10, %v518_v10  ;;  %v519_v15 = vmax.f32 %v503_v11, 0.0 }
 0x119   :  { %601 = vst.msk [vmem:[%s1052_s3 + $0x38] sm:$0xf] %vm586_vm0, %v702_v12  ;;  %v703_v16 = vpack.c.bf16 %v521_v13, %v521_v13 }
 0x11a   :  { %599 = vst.msk [vmem:[%s1052_s3 + $0x30] sm:$0xf] %vm586_vm0, %v700_v14  ;;  %v701_v17 = vpack.c.bf16 %v519_v15, %v519_v15 }
 0x11b   :  { %602 = vst.msk [vmem:[%s1052_s3 + $0x3c] sm:$0xf] %vm586_vm0, %v703_v16 }
 0x11c   :  { %600 = vst.msk [vmem:[%s1052_s3 + $0x34] sm:$0xf] %vm586_vm0, %v701_v17 }

// kernel: _lambda_.3
= control target key start
LH: loop header
LB: loop body
LE: loop exit
PB: predicated region body
PF: predicated region fallthrough
CT: control target
= control target key end

     0   :  { %v120_v28 = vlaneseq  ;;  %v3167_v35 = vmov 1966171168   ;;  %s4170_s0 = inlined_call_operand.vmem [shape: bf16[9,2,512], index: 0, kind: input, shape index: {}]   ;;  %s4171_s1 = inlined_call_operand.vmem [shape: bf16[512,64], index: 1, kind: input, shape index: {}]   ;;  %s4172_s2 = inlined_call_operand.vmem [shape: f32[1,64], index: 2, kind: input, shape index: {}, may-alias: {2,4}]   ;;  %s4173_s3 = inlined_call_operand.vmem [shape: bf16[9,64,64], index: 3, kind: input, shape index: {}]   ;;  %s4174_s4 = inlined_call_operand.vmem [shape: f32[1,64], index: 4, kind: input, shape index: {}, may-alias: {2,4}]   ;;  %s4175_s5 = inlined_call_operand.vmem [shape: bf16[64,128], index: 5, kind: input, shape index: {}]   ;;  %s4176_s6 = inlined_call_operand.vmem [shape: f32[1,128], index: 6, kind: input, shape index: {}, may-alias: {6,8}]   ;;  %s4177_s7 = inlined_call_operand.vmem [shape: bf16[128,128], index: 7, kind: input, shape index: {}]   ;;  %s4178_s8 = inlined_call_operand.vmem [shape: f32[1,128], index: 8, kind: input, shape index: {}, may-alias: {6,8}]   ;;  %s4179_s9 = inlined_call_operand.vmem [shape: f32[2,128], index: 9, kind: output, shape index: {0}]   ;;  %s4180_s10 = inlined_call_operand.hbm [shape: f32[2,64], index: 10, kind: output, shape index: {1}]  }
   0x1   :  { %v3229_v0 = vld [vmem:[%s4171_s1 + $0x40] sm:$0xff]   ;;  %v3252_v4 = vld [vmem:[%s4171_s1 + $0x48] sm:$0xff]   ;;  %v3276_v8 = vld [vmem:[%s4171_s1 + $0x50] sm:$0xff]   ;;  %v118_v36 = vunpack.c.l.s4 %v3167_v35 }
   0x2   :  { %v3234_v1 = vld [vmem:[%s4171_s1 + $0xc0] sm:$0xff]   ;;  %2427 = vmatprep.subr.bf16.mxu0 %v3229_v0  ;;  %v3258_v5 = vld [vmem:[%s4171_s1 + $0xc8] sm:$0xff]   ;;  %v3282_v9 = vld [vmem:[%s4171_s1 + $0xd0] sm:$0xff]   ;;  %v121_v33 = vshrl.u32 %v120_v28, 7 }
   0x3   :  { %v3240_v2 = vld [vmem:[%s4171_s1] sm:$0xff]   ;;  %2449 = vmatprep.subr.bf16.mxu1 %v3234_v1  ;;  %v3264_v6 = vld [vmem:[%s4171_s1 + $0x8] sm:$0xff]   ;;  %v3288_v10 = vld [vmem:[%s4171_s1 + $0x10] sm:$0xff]   ;;  %v119_v39 = vunpack.c.0.s8 %v118_v36 }
   0x4   :  { %v3246_v3 = vld [vmem:[%s4171_s1 + $0x80] sm:$0xff]   ;;  %2428 = vmatpush3.bf16.msra.mxu0 %v3240_v2  ;;  %v3270_v7 = vld [vmem:[%s4171_s1 + $0x88] sm:$0xff]   ;;  %v3294_v11 = vld [vmem:[%s4171_s1 + $0x90] sm:$0xff]  }
   0x5   :  { %2450 = vmatpush3.bf16.msra.mxu1 %v3246_v3  ;;  %2429 = vmatprep.subr.bf16.mxu0 %v3252_v4  ;;  %v3300_v12 = vld [vmem:[%s4171_s1 + $0x58] sm:$0xff]   ;;  %v3324_v16 = vld [vmem:[%s4171_s1 + $0x60] sm:$0xff]   ;;  %v3348_v20 = vld [vmem:[%s4171_s1 + $0x68] sm:$0xff]   ;;  %v3427_v41 = vsub.s32 %v119_v39, %v121_v33 }
   0x6   :  { %2451 = vmatprep.subr.bf16.mxu1 %v3258_v5  ;;  %v3306_v13 = vld [vmem:[%s4171_s1 + $0xd8] sm:$0xff]   ;;  %v3330_v17 = vld [vmem:[%s4171_s1 + $0xe0] sm:$0xff]   ;;  %v3354_v21 = vld [vmem:[%s4171_s1 + $0xe8] sm:$0xff]  }
   0x7   :  { %v3312_v14 = vld [vmem:[%s4171_s1 + $0x18] sm:$0xff]   ;;  %v3336_v18 = vld [vmem:[%s4171_s1 + $0x20] sm:$0xff]   ;;  %v3360_v22 = vld [vmem:[%s4171_s1 + $0x28] sm:$0xff]  }
   0x8   :  { %2430 = vmatpush3.bf16.msra.mxu0 %v3264_v6  ;;  %v3318_v15 = vld [vmem:[%s4171_s1 + $0x98] sm:$0xff]   ;;  %v3342_v19 = vld [vmem:[%s4171_s1 + $0xa0] sm:$0xff]   ;;  %v3366_v23 = vld [vmem:[%s4171_s1 + $0xa8] sm:$0xff]  }
   0x9   :  { %2452 = vmatpush3.bf16.msra.mxu1 %v3270_v7  ;;  %2431 = vmatprep.subr.bf16.mxu0 %v3276_v8  ;;  %v3372_v24 = vld [vmem:[%s4171_s1 + $0x70] sm:$0xff]   ;;  %v3396_v29 = vld [vmem:[%s4171_s1 + $0x78] sm:$0xff]   ;;  %v2253_v34 = vld.sshfl [vmem:[%s4170_s0] sm:$0x33 pattern:$0x75316420] }
   0xa   :  { %2453 = vmatprep.subr.bf16.mxu1 %v3282_v9  ;;  %v3378_v25 = vld [vmem:[%s4171_s1 + $0xf0] sm:$0xff]   ;;  %v3402_v30 = vld [vmem:[%s4171_s1 + $0xf8] sm:$0xff]   ;;  %v2287_v37 = vld.sshfl [vmem:[%s4170_s0 + $0x4] sm:$0x33 pattern:$0x75316420]  ;;  %v116_v38 = vcombine.high %v2253_v34, %v2253_v34  ;;  %v123_v43 = vrot.slane %v2253_v34, %v3427_v41 }
   0xb   :  { %v3384_v26 = vld [vmem:[%s4171_s1 + $0x30] sm:$0xff]   ;;  %v3408_v31 = vld [vmem:[%s4171_s1 + $0x38] sm:$0xff]   ;;  %v429_v40 = vcombine.high %v2287_v37, %v2287_v37 }
   0xc   :  { %2432 = vmatpush3.bf16.msra.mxu0 %v3288_v10  ;;  %v3390_v27 = vld [vmem:[%s4171_s1 + $0xb0] sm:$0xff]   ;;  %v3414_v32 = vld [vmem:[%s4171_s1 + $0xb8] sm:$0xff]   ;;  %v130_v42 = vrot.slane %v116_v38, %v3427_v41  ;;  %v131_v46 = vcombine.high %v123_v43, %v123_v43 }
   0xd   :  { %2454 = vmatpush3.bf16.msra.mxu1 %v3294_v11  ;;  %2433 = vmatprep.subr.bf16.mxu0 %v3300_v12  ;;  %v443_v44 = vrot.slane %v429_v40, %v3427_v41 }
   0xe   :  { %2455 = vmatprep.subr.bf16.mxu1 %v3306_v13  ;;  %361 = vmatprep.mubr.bf16.mxu0 %v130_v42  ;;  %v132_v45 = vcombine.high %v130_v42, %v130_v42 }
   0xf   :  { %v445_v47 = vcombine.high %v443_v44, %v443_v44 }
  0x10   :  { %2434 = vmatpush3.bf16.msra.mxu0 %v3312_v14  ;;  %401 = vmatprep.mubr.bf16.mxu1 %v132_v45 }
  0x11   :  { %2456 = vmatpush3.bf16.msra.mxu1 %v3318_v15  ;;  %2435 = vmatprep.subr.bf16.mxu0 %v3324_v16 }
  0x12   :  { %2457 = vmatprep.subr.bf16.mxu1 %v3330_v17 }
  0x14   :  { %2436 = vmatpush3.bf16.msra.mxu0 %v3336_v18 }
  0x15   :  { %2458 = vmatpush3.bf16.msra.mxu1 %v3342_v19  ;;  %2437 = vmatprep.subr.bf16.mxu0 %v3348_v20 }
  0x16   :  { %2459 = vmatprep.subr.bf16.mxu1 %v3354_v21 }
  0x18   :  { %2438 = vmatpush3.bf16.msra.mxu0 %v3360_v22 }
  0x19   :  { %2460 = vmatpush3.bf16.msra.mxu1 %v3366_v23  ;;  %2439 = vmatprep.subr.bf16.mxu0 %v3372_v24 }
  0x1a   :  { %2461 = vmatprep.subr.bf16.mxu1 %v3378_v25 }
  0x1c   :  { %2440 = vmatpush3.bf16.msra.mxu0 %v3384_v26 }
  0x1d   :  { %2462 = vmatpush3.bf16.msra.mxu1 %v3390_v27  ;;  %2441 = vmatprep.subr.bf16.mxu0 %v3396_v29 }
  0x1e   :  { %2463 = vmatprep.subr.bf16.mxu1 %v3402_v30 }
  0x20   :  { %2442 = vmatpush3.bf16.msra.mxu0 %v3408_v31 }
  0x21   :  { %2464 = vmatpush3.bf16.msra.mxu1 %v3414_v32  ;;  %2471 = vmatprep.subr.bf16.mxu0 %v3229_v0 }
  0x22   :  { %2493 = vmatprep.subr.bf16.mxu1 %v3234_v1 }
  0x23   :  { %362 = vmatmul.mubr.bf16.vlgmr.msra.gmra.mrb[0].mxu0 %v123_v43 }
  0x24   :  { %2472 = vmatpush3.bf16.msra.mxu0 %v3240_v2  ;;  %402 = vmatmul.mubr.bf16.vlgmr.msra.gmra.mrb[0].mxu1 %v131_v46 }
  0x25   :  { %2473 = vmatprep.subr.bf16.mxu0 %v3252_v4  ;;  %2494 = vmatpush3.bf16.msra.mxu1 %v3246_v3 }
  0x26   :  { %482 = vmatprep.mubr.bf16.mxu0 %v443_v44  ;;  %2495 = vmatprep.subr.bf16.mxu1 %v3258_v5 }
  0x27   :  { %522 = vmatprep.mubr.bf16.mxu1 %v445_v47 }
  0x28   :  { %2474 = vmatpush3.bf16.msra.mxu0 %v3264_v6 }
  0x29   :  { %2475 = vmatprep.subr.bf16.mxu0 %v3276_v8  ;;  %2496 = vmatpush3.bf16.msra.mxu1 %v3270_v7 }
  0x2a   :  { %2497 = vmatprep.subr.bf16.mxu1 %v3282_v9 }
  0x2c   :  { %2476 = vmatpush3.bf16.msra.mxu0 %v3288_v10 }
  0x2d   :  { %2477 = vmatprep.subr.bf16.mxu0 %v3300_v12  ;;  %2498 = vmatpush3.bf16.msra.mxu1 %v3294_v11 }
  0x2e   :  { %2499 = vmatprep.subr.bf16.mxu1 %v3306_v13 }
  0x30   :  { %2478 = vmatpush3.bf16.msra.mxu0 %v3312_v14 }
  0x31   :  { %2479 = vmatprep.subr.bf16.mxu0 %v3324_v16  ;;  %2500 = vmatpush3.bf16.msra.mxu1 %v3318_v15 }
  0x32   :  { %2501 = vmatprep.subr.bf16.mxu1 %v3330_v17 }
  0x34   :  { %2480 = vmatpush3.bf16.msra.mxu0 %v3336_v18 }
  0x35   :  { %2481 = vmatprep.subr.bf16.mxu0 %v3348_v20  ;;  %2502 = vmatpush3.bf16.msra.mxu1 %v3342_v19 }
  0x36   :  { %2503 = vmatprep.subr.bf16.mxu1 %v3354_v21 }
  0x38   :  { %2482 = vmatpush3.bf16.msra.mxu0 %v3360_v22 }
  0x39   :  { %2483 = vmatprep.subr.bf16.mxu0 %v3372_v24  ;;  %2504 = vmatpush3.bf16.msra.mxu1 %v3366_v23 }
  0x3a   :  { %16 = vsyncpa [#allocation3], 0  ;;  %2505 = vmatprep.subr.bf16.mxu1 %v3378_v25  ;;  %v436_v48 = vrot.slane %v2287_v37, %v3427_v41  ;;  %v3058_v50 = vld [vmem:[%s4173_s3 + $0x20] sm:$0xff]   ;;  %v3168_v51 = vmov 0.0   ;;  %v3059_v52 = vld [vmem:[%s4173_s3 + $0x28] sm:$0xff]   ;;  %vm3169_vm0 = vmmov 0  }
  0x3b   :  { %v3060_v53 = vld [vmem:[%s4173_s3 + $0x30] sm:$0xff]   ;;  %v3061_v54 = vld [vmem:[%s4173_s3 + $0x38] sm:$0xff]   ;;  %v2307_v55 = vld.sshfl [vmem:[%s4170_s0 + $0x8] sm:$0x33 pattern:$0x75316420] }
  0x3c   :  { %2484 = vmatpush3.bf16.msra.mxu0 %v3384_v26  ;;  %v444_v49 = vcombine.high %v436_v48, %v436_v48  ;;  %v686_v56 = vcombine.high %v2307_v55, %v2307_v55  ;;  %v3504_v58 = vrot.slane %v2307_v55, %v3427_v41  ;;  %v3512_v60 = vld [vmem:[%s4172_s2] ss:$0 sm:$0xff]  ;;  %vm565_vm1 = vcmask 523264  }
  0x3d   :  { %2485 = vmatprep.subr.bf16.mxu0 %v3396_v29  ;;  %2506 = vmatpush3.bf16.msra.mxu1 %v3390_v27  ;;  %vm2015_vm2 = vcmask 517120   ;;  %vm2217_vm5 = vcmask 1041408  }
  0x3e   :  { %2507 = vmatprep.subr.bf16.mxu1 %v3402_v30  ;;  %v700_v57 = vrot.slane %v686_v56, %v3427_v41  ;;  %v3062_v56 = vld [vmem:[%s4173_s3] sm:$0xff]  }
  0x40   :  { %2486 = vmatpush3.bf16.msra.mxu0 %v3408_v31 }
  0x41   :  { %2525 = vmatprep.subr.bf16.mxu0 %v3229_v0  ;;  %2508 = vmatpush3.bf16.msra.mxu1 %v3414_v32 }
  0x42   :  { %2882 = vmatprep.subr.bf16.mxu1 %v3168_v51 }
  0x43   :  { %483 = vmatmul.mubr.bf16.vlgmr.msra.gmra.mrb[4].mxu0 %v436_v48 }
  0x44   :  { %2526 = vmatpush3.bf16.msra.mxu0 %v3240_v2  ;;  %523 = vmatmul.mubr.bf16.vlgmr.msra.gmra.mrb[4].mxu1 %v444_v49 }
  0x45   :  { %2527 = vmatprep.subr.bf16.mxu0 %v3252_v4  ;;  %2883 = vmatpush3.bf16.msra.mxu1 %v3058_v50 }
  0x46   :  { %2884 = vmatprep.subr.bf16.mxu1 %v3168_v51  ;;  %2890 = vmatprep.mubr.msk.bf16.mxu1 %vm3169_vm0, %v3168_v51 }
  0x47   :  { %739 = vmatprep.mubr.bf16.mxu0 %v700_v57 }
  0x48   :  { %2528 = vmatpush3.bf16.msra.mxu0 %v3264_v6 }
  0x49   :  { %2529 = vmatprep.subr.bf16.mxu0 %v3276_v8  ;;  %2885 = vmatpush3.bf16.msra.mxu1 %v3059_v52 }
  0x4a   :  { %2886 = vmatprep.subr.bf16.mxu1 %v3168_v51 }
  0x4c   :  { %2530 = vmatpush3.bf16.msra.mxu0 %v3288_v10 }
  0x4d   :  { %2531 = vmatprep.subr.bf16.mxu0 %v3300_v12  ;;  %2887 = vmatpush3.bf16.msra.mxu1 %v3060_v53 }
  0x4e   :  { %2888 = vmatprep.subr.bf16.mxu1 %v3168_v51 }
  0x50   :  { %2532 = vmatpush3.bf16.msra.mxu0 %v3312_v14 }
  0x51   :  { %2533 = vmatprep.subr.bf16.mxu0 %v3324_v16  ;;  %2889 = vmatpush3.bf16.msra.mxu1 %v3061_v54 }
  0x52   :  { %2894 = vmatprep.subr.bf16.mxu1 %v3168_v51 }
  0x54   :  { %2534 = vmatpush3.bf16.msra.mxu0 %v3336_v18 }
  0x55   :  { %2535 = vmatprep.subr.bf16.mxu0 %v3348_v20 }
  0x58   :  { %2536 = vmatpush3.bf16.msra.mxu0 %v3360_v22 }
  0x59   :  { %2537 = vmatprep.subr.bf16.mxu0 %v3372_v24 }
  0x5c   :  { %2538 = vmatpush3.bf16.msra.mxu0 %v3384_v26 }
  0x5d   :  { %2539 = vmatprep.subr.bf16.mxu0 %v3396_v29 }
  0x60   :  { %2540 = vmatpush3.bf16.msra.mxu0 %v3408_v31 }
  0x61   :  { %2906 = vmatprep.subr.bf16.mxu0 %v3168_v51 }
  0x63   :  { %740 = vmatmul.mubr.bf16.vlgmr.msra.gmra.mrb[8].mxu0 %v3504_v58 }
  0x64   :  { %2914 = vmatprep.mubr.msk.bf16.mxu0 %vm3169_vm0, %v3168_v51 }
  0xf6   :  { %v2443_v59 = vpop.f32.mrb[0].mxu0 }
  0xf7   :  { %v2444_v61 = vpop.f32.mrb[1].mxu0  ;;  %v2465_v62 = vpop.f32.mrb[0].mxu1 }
  0xf8   :  { %v2445_v63 = vadd.f32 %v2444_v61, %v2443_v59  ;;  %v2446_v33 = vpop.f32.mrb[2].mxu0  ;;  %v2466_v34 = vpop.f32.mrb[1].mxu1  ;;  %v3063_v61 = vld [vmem:[%s4173_s3 + $0x8] sm:$0xff]  }
  0xf9   :  { %v2447_v35 = vpop.f32.mrb[3].mxu0  ;;  %v2467_v37 = vadd.f32 %v2466_v34, %v2465_v62  ;;  %v2468_v38 = vpop.f32.mrb[2].mxu1  ;;  %v3064_v62 = vld [vmem:[%s4173_s3 + $0x10] sm:$0xff]   ;;  %v702_v34 = vcombine.high %v700_v57, %v700_v57  ;;  %v701_v57 = vcombine.high %v3504_v58, %v3504_v58  ;;  %v3066_v58 = vld [vmem:[%s4173_s3 + $0x40] sm:$0xff]  }
  0xfa   :  { %v364_v36 = vadd.f32 %v2445_v63, %v3512_v60  ;;  %v2469_v39 = vpop.f32.mrb[3].mxu1  ;;  %v3065_v63 = vld [vmem:[%s4173_s3 + $0x18] sm:$0xff]   ;;  %2907 = vmatpush3.bf16.msra.mxu0 %v3066_v58 }
  0xfb   :  { %2908 = vmatprep.subr.bf16.mxu0 %v3168_v51 }
  0xfc   :  { %v404_v40 = vadd.f32 %v2467_v37, %v364_v36  ;;  %v3067_v36 = vld [vmem:[%s4173_s3 + $0x48] sm:$0xff]  }
  0xfe   :  { %v409_v33 = vmax.f32 %v404_v40, 0.0  ;;  %2909 = vmatpush3.bf16.msra.mxu0 %v3067_v36 }
  0xff   :  { %2910 = vmatprep.subr.bf16.mxu0 %v3168_v51 }
 0x100   :  { %v410_v35 = vpack.c.bf16 %v409_v33, %v409_v33 }
 0x116   :  { %v2487_v42 = vpop.f32.mrb[4].mxu0 }
 0x117   :  { %v2488_v43 = vpop.f32.mrb[5].mxu0  ;;  %v2509_v44 = vpop.f32.mrb[4].mxu1 }
 0x118   :  { %v2489_v45 = vadd.f32 %v2488_v43, %v2487_v42  ;;  %v2490_v46 = vpop.f32.mrb[6].mxu0  ;;  %v2510_v47 = vpop.f32.mrb[5].mxu1  ;;  %v3068_v43 = vld [vmem:[%s4173_s3 + $0x50] sm:$0xff]  }
 0x119   :  { %v2491_v48 = vpop.f32.mrb[7].mxu0  ;;  %v2511_v50 = vadd.f32 %v2510_v47, %v2509_v44  ;;  %v2512_v52 = vpop.f32.mrb[6].mxu1  ;;  %2911 = vmatpush3.bf16.msra.mxu0 %v3068_v43  ;;  %v3069_v44 = vld [vmem:[%s4173_s3 + $0x58] sm:$0xff]   ;;  %v3072_v43 = vld [vmem:[%s4173_s3 + $0x70] sm:$0xff]  }
 0x11a   :  { %v485_v49 = vadd.f32 %v2489_v45, %v3512_v60  ;;  %v2513_v53 = vpop.f32.mrb[7].mxu1  ;;  %2912 = vmatprep.subr.bf16.mxu0 %v3168_v51  ;;  %v2322_v45 = vld.sshfl [vmem:[%s4170_s0 + $0xc] sm:$0x33 pattern:$0x75316420] }
 0x11b   :  { %v876_v46 = vcombine.high %v2322_v45, %v2322_v45  ;;  %v883_v48 = vrot.slane %v2322_v45, %v3427_v41  ;;  %v2337_v45 = vld.sshfl [vmem:[%s4170_s0 + $0x10] sm:$0x33 pattern:$0x75316420] }
 0x11c   :  { %v525_v54 = vadd.f32 %v2511_v50, %v485_v49 }
 0x11d   :  { %2913 = vmatpush3.bf16.msra.mxu0 %v3069_v44  ;;  %v890_v47 = vrot.slane %v876_v46, %v3427_v41  ;;  %v3073_v44 = vld [vmem:[%s4173_s3 + $0x78] sm:$0xff]   ;;  %v1066_v46 = vcombine.high %v2337_v45, %v2337_v45 }
 0x11e   :  { %v530_v55 = vmax.f32 %v525_v54, 0.0  ;;  %2596 = vmatprep.subr.bf16.mxu0 %v3234_v1 }
 0x120   :  { %v531_v59 = vpack.c.bf16 %v530_v55, %v530_v55 }
 0x122   :  { %2891 = vmatmul.mubr.msk.bf16.vlgmr.msra.gmra.mrb[8].mxu1 %vm565_vm1, %v531_v59 }
 0x123   :  { %2895 = vmatpush3.bf16.msra.mxu1 %v3062_v56  ;;  %2902 = vmatprep.mubr.msk.bf16.mxu1 %vm3169_vm0, %v3168_v51 }
 0x124   :  { %2896 = vmatprep.subr.bf16.mxu1 %v3168_v51 }
 0x127   :  { %2897 = vmatpush3.bf16.msra.mxu1 %v3063_v61 }
 0x128   :  { %2898 = vmatprep.subr.bf16.mxu1 %v3168_v51 }
 0x12b   :  { %2899 = vmatpush3.bf16.msra.mxu1 %v3064_v62 }
 0x12c   :  { %2900 = vmatprep.subr.bf16.mxu1 %v3168_v51 }
 0x12f   :  { %2901 = vmatpush3.bf16.msra.mxu1 %v3065_v63 }
 0x130   :  { %2547 = vmatprep.subr.bf16.mxu1 %v3234_v1 }
 0x132   :  { %2903 = vmatmul.mubr.msk.bf16.vlgmr.msra.gmra.mrb[12].mxu1 %vm565_vm1, %v410_v35 }
 0x133   :  { %2548 = vmatpush3.bf16.msra.mxu1 %v3246_v3  ;;  %779 = vmatprep.mubr.bf16.mxu1 %v702_v34 }
 0x134   :  { %2549 = vmatprep.subr.bf16.mxu1 %v3258_v5 }
 0x136   :  { %v2541_v37 = vpop.f32.mrb[8].mxu0 }
 0x137   :  { %2550 = vmatpush3.bf16.msra.mxu1 %v3270_v7  ;;  %v2542_v38 = vpop.f32.mrb[9].mxu0 }
 0x138   :  { %2551 = vmatprep.subr.bf16.mxu1 %v3282_v9  ;;  %v2543_v39 = vadd.f32 %v2542_v38, %v2541_v37  ;;  %v2544_v40 = vpop.f32.mrb[10].mxu0  ;;  %v892_v37 = vcombine.high %v890_v47, %v890_v47 }
 0x139   :  { %v2545_v42 = vpop.f32.mrb[11].mxu0 }
 0x13a   :  { %v742_v62 = vadd.f32 %v2543_v39, %v3512_v60  ;;  %v891_v39 = vcombine.high %v883_v48, %v883_v48 }
 0x13b   :  { %2552 = vmatpush3.bf16.msra.mxu1 %v3294_v11 }
 0x13c   :  { %2553 = vmatprep.subr.bf16.mxu1 %v3306_v13 }
 0x13f   :  { %2554 = vmatpush3.bf16.msra.mxu1 %v3318_v15 }
 0x140   :  { %2555 = vmatprep.subr.bf16.mxu1 %v3330_v17 }
 0x143   :  { %2556 = vmatpush3.bf16.msra.mxu1 %v3342_v19 }
 0x144   :  { %2557 = vmatprep.subr.bf16.mxu1 %v3354_v21 }
 0x147   :  { %2558 = vmatpush3.bf16.msra.mxu1 %v3366_v23 }
 0x148   :  { %2559 = vmatprep.subr.bf16.mxu1 %v3378_v25 }
 0x14b   :  { %2560 = vmatpush3.bf16.msra.mxu1 %v3390_v27 }
 0x14c   :  { %2561 = vmatprep.subr.bf16.mxu1 %v3402_v30 }
 0x14f   :  { %2562 = vmatpush3.bf16.msra.mxu1 %v3414_v32 }
 0x150   :  { %2574 = vmatprep.subr.bf16.mxu1 %v3229_v0 }
 0x152   :  { %780 = vmatmul.mubr.bf16.vlgmr.msra.gmra.mrb[16].mxu1 %v701_v57 }
 0x153   :  { %2575 = vmatpush3.bf16.msra.mxu1 %v3240_v2  ;;  %929 = vmatprep.mubr.bf16.mxu1 %v890_v47  ;;  %v1080_v47 = vrot.slane %v1066_v46, %v3427_v41  ;;  %v3762_v46 = vld [vmem:[%s4171_s1 + $0x88] sm:$0xff]  }
 0x154   :  { %2576 = vmatprep.subr.bf16.mxu1 %v3252_v4 }
 0x157   :  { %2577 = vmatpush3.bf16.msra.mxu1 %v3264_v6 }
 0x158   :  { %2578 = vmatprep.subr.bf16.mxu1 %v3276_v8 }
 0x15b   :  { %2579 = vmatpush3.bf16.msra.mxu1 %v3288_v10 }
 0x15c   :  { %2580 = vmatprep.subr.bf16.mxu1 %v3300_v12 }
 0x15f   :  { %2581 = vmatpush3.bf16.msra.mxu1 %v3312_v14 }
 0x160   :  { %2582 = vmatprep.subr.bf16.mxu1 %v3324_v16 }
 0x163   :  { %2583 = vmatpush3.bf16.msra.mxu1 %v3336_v18 }
 0x164   :  { %2584 = vmatprep.subr.bf16.mxu1 %v3348_v20 }
 0x167   :  { %2585 = vmatpush3.bf16.msra.mxu1 %v3360_v22 }
 0x168   :  { %2586 = vmatprep.subr.bf16.mxu1 %v3372_v24 }
 0x16b   :  { %2587 = vmatpush3.bf16.msra.mxu1 %v3384_v26 }
 0x16c   :  { %2588 = vmatprep.subr.bf16.mxu1 %v3396_v29 }
 0x16f   :  { %2589 = vmatpush3.bf16.msra.mxu1 %v3408_v31 }
 0x170   :  { %2918 = vmatprep.subr.bf16.mxu1 %v3168_v51 }
 0x172   :  { %930 = vmatmul.mubr.bf16.vlgmr.msra.gmra.mrb[20].mxu1 %v883_v48  ;;  %v1073_v48 = vrot.slane %v2337_v45, %v3427_v41  ;;  %v3756_v45 = vld [vmem:[%s4171_s1 + $0xc8] sm:$0xff]  }
 0x173   :  { %2926 = vmatprep.mubr.msk.bf16.mxu1 %vm3169_vm0, %v3168_v51 }
 0x1f5   :  { %v603_v49 = vpop.f32.mrb[8].mxu1 }
 0x1f6   :  { %v2892_v50 = vpop.f32.mrb[9].mxu1 }
 0x1f7   :  { %v606_v52 = vpop.f32.mrb[10].mxu1 }
 0x1f8   :  { %v2893_v53 = vpop.f32.mrb[11].mxu1 }
 0x205   :  { %v670_v54 = vpop.f32.mrb[12].mxu1 }
 0x206   :  { %v3593_v55 = vadd.f32 %v670_v54, %v603_v49  ;;  %v2904_v56 = vpop.f32.mrb[13].mxu1 }
 0x207   :  { %v673_v59 = vpop.f32.mrb[14].mxu1 }
 0x208   :  { %v2905_v61 = vpop.f32.mrb[15].mxu1 }
 0x225   :  { %v2563_v63 = vpop.f32.mrb[16].mxu1 }
 0x226   :  { %v2564_v33 = vpop.f32.mrb[17].mxu1 }
 0x227   :  { %v2565_v34 = vadd.f32 %v2564_v33, %v2563_v63  ;;  %v2566_v35 = vpop.f32.mrb[18].mxu1 }
 0x228   :  { %v2567_v57 = vpop.f32.mrb[19].mxu1  ;;  %v1082_v35 = vcombine.high %v1080_v47, %v1080_v47 }
 0x229   :  { %v782_v58 = vadd.f32 %v2565_v34, %v742_v62 }
 0x22b   :  { %v787_v36 = vmax.f32 %v782_v58, 0.0 }
 0x22d   :  { %v788_v38 = vpack.c.bf16 %v787_v36, %v787_v36 }
 0x22f   :  { %2915 = vmatmul.mubr.msk.bf16.vlgmr.msra.gmra.mrb[12].mxu0 %vm565_vm1, %v788_v38 }
 0x230   :  { %2597 = vmatpush3.bf16.msra.mxu0 %v3246_v3  ;;  %969 = vmatprep.mubr.bf16.mxu0 %v892_v37 }
 0x231   :  { %2598 = vmatprep.subr.bf16.mxu0 %v3258_v5 }
 0x234   :  { %2599 = vmatpush3.bf16.msra.mxu0 %v3270_v7 }
 0x235   :  { %2600 = vmatprep.subr.bf16.mxu0 %v3282_v9 }
 0x238   :  { %2601 = vmatpush3.bf16.msra.mxu0 %v3294_v11 }
 0x239   :  { %2602 = vmatprep.subr.bf16.mxu0 %v3306_v13 }
 0x23c   :  { %2603 = vmatpush3.bf16.msra.mxu0 %v3318_v15 }
 0x23d   :  { %2604 = vmatprep.subr.bf16.mxu0 %v3330_v17 }
 0x240   :  { %2605 = vmatpush3.bf16.msra.mxu0 %v3342_v19 }
 0x241   :  { %2606 = vmatprep.subr.bf16.mxu0 %v3354_v21 }
 0x244   :  { %2607 = vmatpush3.bf16.msra.mxu0 %v3366_v23 }
 0x245   :  { %2608 = vmatprep.subr.bf16.mxu0 %v3378_v25 }
 0x248   :  { %2609 = vmatpush3.bf16.msra.mxu0 %v3390_v27 }
 0x249   :  { %2610 = vmatprep.subr.bf16.mxu0 %v3402_v30 }
 0x24c   :  { %2611 = vmatpush3.bf16.msra.mxu0 %v3414_v32 }
 0x24d   :  { %2623 = vmatprep.subr.bf16.mxu0 %v3229_v0  ;;  %v3070_v0 = vld [vmem:[%s4173_s3 + $0x60] sm:$0xff]  }
 0x24e   :  { %2919 = vmatpush3.bf16.msra.mxu1 %v3070_v0 }
 0x24f   :  { %970 = vmatmul.mubr.bf16.vlgmr.msra.gmra.mrb[16].mxu0 %v891_v39  ;;  %2920 = vmatprep.subr.bf16.mxu1 %v3168_v51 }
 0x250   :  { %2624 = vmatpush3.bf16.msra.mxu0 %v3240_v2  ;;  %v3071_v2 = vld [vmem:[%s4173_s3 + $0x68] sm:$0xff]   ;;  %1119 = vmatprep.mubr.bf16.mxu0 %v1080_v47  ;;  %v3768_v47 = vld [vmem:[%s4171_s1 + $0xd0] sm:$0xff]  }
 0x251   :  { %2625 = vmatprep.subr.bf16.mxu0 %v3252_v4  ;;  %v2590_v4 = vpop.f32.mrb[20].mxu1 }
 0x252   :  { %2921 = vmatpush3.bf16.msra.mxu1 %v3071_v2 }
 0x253   :  { %2922 = vmatprep.subr.bf16.mxu1 %v3168_v51 }
 0x254   :  { %2626 = vmatpush3.bf16.msra.mxu0 %v3264_v6  ;;  %v2591_v6 = vpop.f32.mrb[21].mxu1 }
 0x255   :  { %2627 = vmatprep.subr.bf16.mxu0 %v3276_v8  ;;  %v2592_v8 = vadd.f32 %v2591_v6, %v2590_v4  ;;  %v2593_v40 = vpop.f32.mrb[22].mxu1 }
 0x256   :  { %v2594_v42 = vpop.f32.mrb[23].mxu1  ;;  %2923 = vmatpush3.bf16.msra.mxu1 %v3072_v43 }
 0x257   :  { %2924 = vmatprep.subr.bf16.mxu1 %v3168_v51  ;;  %v932_v54 = vadd.f32 %v2592_v8, %v3512_v60 }
 0x258   :  { %2628 = vmatpush3.bf16.msra.mxu0 %v3288_v10 }
 0x259   :  { %2629 = vmatprep.subr.bf16.mxu0 %v3300_v12 }
 0x25a   :  { %2925 = vmatpush3.bf16.msra.mxu1 %v3073_v44  ;;  %v3750_v44 = vld [vmem:[%s4171_s1 + $0x80] sm:$0xff]  }
 0x25b   :  { %2645 = vmatprep.subr.bf16.mxu1 %v3234_v1 }
 0x25c   :  { %2630 = vmatpush3.bf16.msra.mxu0 %v3312_v14 }
 0x25d   :  { %2631 = vmatprep.subr.bf16.mxu0 %v3324_v16 }
 0x260   :  { %2632 = vmatpush3.bf16.msra.mxu0 %v3336_v18 }
 0x261   :  { %2633 = vmatprep.subr.bf16.mxu0 %v3348_v20 }
 0x264   :  { %2634 = vmatpush3.bf16.msra.mxu0 %v3360_v22 }
 0x265   :  { %2635 = vmatprep.subr.bf16.mxu0 %v3372_v24 }
 0x268   :  { %2636 = vmatpush3.bf16.msra.mxu0 %v3384_v26 }
 0x269   :  { %2637 = vmatprep.subr.bf16.mxu0 %v3396_v29 }
 0x26c   :  { %2638 = vmatpush3.bf16.msra.mxu0 %v3408_v31 }
 0x26d   :  { %2930 = vmatprep.subr.bf16.mxu0 %v3168_v51 }
 0x26f   :  { %1120 = vmatmul.mubr.bf16.vlgmr.msra.gmra.mrb[20].mxu0 %v1073_v48 }
 0x270   :  { %2938 = vmatprep.mubr.msk.bf16.mxu0 %vm3169_vm0, %v3168_v51 }
 0x302   :  { %v859_v49 = vpop.f32.mrb[12].mxu0 }
 0x303   :  { %v3653_v50 = vadd.f32 %v859_v49, %v3593_v55  ;;  %v2916_v52 = vpop.f32.mrb[13].mxu0  ;;  %v3780_v49 = vld [vmem:[%s4171_s1 + $0xd8] sm:$0xff]  }
 0x304   :  { %v862_v1 = vpop.f32.mrb[14].mxu0  ;;  %v3792_v52 = vld [vmem:[%s4171_s1 + $0xe0] sm:$0xff]  }
 0x305   :  { %v2917_v53 = vpop.f32.mrb[15].mxu0  ;;  %v3798_v1 = vld [vmem:[%s4171_s1 + $0xa0] sm:$0xff]  }
 0x306   :  { %v3804_v53 = vld [vmem:[%s4171_s1 + $0xe8] sm:$0xff]  }
 0x322   :  { %v2612_v56 = vpop.f32.mrb[16].mxu0 }
 0x323   :  { %v2613_v59 = vpop.f32.mrb[17].mxu0 }
 0x324   :  { %v2614_v61 = vadd.f32 %v2613_v59, %v2612_v56  ;;  %v2615_v62 = vpop.f32.mrb[18].mxu0  ;;  %v3849_v59 = vld [vmem:[%s4171_s1 + $0x20] sm:$0xff]  }
 0x325   :  { %v2616_v63 = vpop.f32.mrb[19].mxu0  ;;  %v3861_v62 = vld [vmem:[%s4171_s1 + $0x28] sm:$0xff]  }
 0x326   :  { %v972_v33 = vadd.f32 %v2614_v61, %v932_v54  ;;  %v3810_v54 = vld [vmem:[%s4171_s1 + $0xa8] sm:$0xff]   ;;  %v3867_v63 = vld [vmem:[%s4171_s1 + $0x70] sm:$0xff]  }
 0x327   :  { %v3855_v61 = vld [vmem:[%s4171_s1 + $0x68] sm:$0xff]  }
 0x328   :  { %v977_v34 = vmax.f32 %v972_v33, 0.0  ;;  %v3873_v33 = vld [vmem:[%s4171_s1 + $0x30] sm:$0xff]  }
 0x32a   :  { %v978_v57 = vpack.c.bf16 %v977_v34, %v977_v34  ;;  %v3879_v34 = vld [vmem:[%s4171_s1 + $0x78] sm:$0xff]  }
 0x32c   :  { %2927 = vmatmul.mubr.msk.bf16.vlgmr.msra.gmra.mrb[24].mxu1 %vm565_vm1, %v978_v57  ;;  %v3079_v57 = vld [vmem:[%s4173_s3 + $0xa8] sm:$0xff]  }
 0x32d   :  { %2646 = vmatpush3.bf16.msra.mxu1 %v3246_v3  ;;  %1159 = vmatprep.mubr.bf16.mxu1 %v1082_v35  ;;  %v1081_v3 = vcombine.high %v1073_v48, %v1073_v48  ;;  %v3774_v48 = vld [vmem:[%s4171_s1 + $0x90] sm:$0xff]   ;;  %v3078_v35 = vld [vmem:[%s4173_s3 + $0xa0] sm:$0xff]  }
 0x32e   :  { %2647 = vmatprep.subr.bf16.mxu1 %v3258_v5  ;;  %v3675_v5 = vld [vmem:[%s4171_s1 + $0x40] sm:$0xff]  }
 0x331   :  { %2648 = vmatpush3.bf16.msra.mxu1 %v3270_v7  ;;  %v3681_v7 = vld [vmem:[%s4171_s1] sm:$0xff]  }
 0x332   :  { %2649 = vmatprep.subr.bf16.mxu1 %v3282_v9  ;;  %v3687_v9 = vld [vmem:[%s4171_s1 + $0x48] sm:$0xff]  }
 0x335   :  { %2650 = vmatpush3.bf16.msra.mxu1 %v3294_v11  ;;  %v3693_v11 = vld [vmem:[%s4171_s1 + $0x8] sm:$0xff]  }
 0x336   :  { %2651 = vmatprep.subr.bf16.mxu1 %v3306_v13  ;;  %v3699_v13 = vld [vmem:[%s4171_s1 + $0x50] sm:$0xff]  }
 0x339   :  { %2652 = vmatpush3.bf16.msra.mxu1 %v3318_v15 }
 0x33a   :  { %2653 = vmatprep.subr.bf16.mxu1 %v3330_v17 }
 0x33d   :  { %2654 = vmatpush3.bf16.msra.mxu1 %v3342_v19  ;;  %v3076_v19 = vld [vmem:[%s4173_s3 + $0x90] sm:$0xff]  }
 0x33e   :  { %2655 = vmatprep.subr.bf16.mxu1 %v3354_v21  ;;  %v3732_v21 = vld [vmem:[%s4171_s1 + $0xc0] sm:$0xff]  }
 0x341   :  { %2656 = vmatpush3.bf16.msra.mxu1 %v3366_v23 }
 0x342   :  { %2657 = vmatprep.subr.bf16.mxu1 %v3378_v25 }
 0x345   :  { %2658 = vmatpush3.bf16.msra.mxu1 %v3390_v27 }
 0x346   :  { %2659 = vmatprep.subr.bf16.mxu1 %v3402_v30 }
 0x349   :  { %2660 = vmatpush3.bf16.msra.mxu1 %v3414_v32 }
 0x34a   :  { %2672 = vmatprep.subr.bf16.mxu1 %v3675_v5 }
 0x34c   :  { %1160 = vmatmul.mubr.bf16.vlgmr.msra.gmra.mrb[28].mxu1 %v1081_v3 }
 0x34d   :  { %2673 = vmatpush3.bf16.msra.mxu1 %v3681_v7 }
 0x34e   :  { %2674 = vmatprep.subr.bf16.mxu1 %v3687_v9 }
 0x351   :  { %2675 = vmatpush3.bf16.msra.mxu1 %v3693_v11 }
 0x352   :  { %2676 = vmatprep.subr.bf16.mxu1 %v3699_v13 }
 0x355   :  { %2677 = vmatpush3.bf16.msra.mxu1 %v3288_v10  ;;  %v3074_v10 = vld [vmem:[%s4173_s3 + $0x80] sm:$0xff]  }
 0x356   :  { %2678 = vmatprep.subr.bf16.mxu1 %v3300_v12  ;;  %2931 = vmatpush3.bf16.msra.mxu0 %v3074_v10  ;;  %v3075_v12 = vld [vmem:[%s4173_s3 + $0x88] sm:$0xff]  }
 0x357   :  { %2932 = vmatprep.subr.bf16.mxu0 %v3168_v51 }
 0x359   :  { %2679 = vmatpush3.bf16.msra.mxu1 %v3312_v14  ;;  %v2639_v14 = vpop.f32.mrb[20].mxu0 }
 0x35a   :  { %2680 = vmatprep.subr.bf16.mxu1 %v3324_v16  ;;  %2933 = vmatpush3.bf16.msra.mxu0 %v3075_v12  ;;  %v2640_v15 = vpop.f32.mrb[21].mxu0 }
 0x35b   :  { %2934 = vmatprep.subr.bf16.mxu0 %v3168_v51  ;;  %v2641_v16 = vadd.f32 %v2640_v15, %v2639_v14  ;;  %v2642_v17 = vpop.f32.mrb[22].mxu0  ;;  %v3080_v15 = vld [vmem:[%s4173_s3 + $0xb0] sm:$0xff]  }
 0x35c   :  { %v2367_v17 = vld.sshfl [vmem:[%s4170_s0 + $0x18] sm:$0x33 pattern:$0x75316420] }
 0x35d   :  { %2681 = vmatpush3.bf16.msra.mxu1 %v3336_v18  ;;  %v2643_v18 = vpop.f32.mrb[23].mxu0  ;;  %v1122_v38 = vadd.f32 %v2641_v16, %v3512_v60  ;;  %v3081_v16 = vld [vmem:[%s4173_s3 + $0xb8] sm:$0xff]  }
 0x35e   :  { %2682 = vmatprep.subr.bf16.mxu1 %v3348_v20  ;;  %2935 = vmatpush3.bf16.msra.mxu0 %v3076_v19  ;;  %v3077_v20 = vld [vmem:[%s4173_s3 + $0x98] sm:$0xff]   ;;  %v1446_v18 = vcombine.high %v2367_v17, %v2367_v17 }
 0x35f   :  { %2936 = vmatprep.subr.bf16.mxu0 %v3168_v51 }
 0x360   :  { %v1460_v19 = vrot.slane %v1446_v18, %v3427_v41  ;;  %v2382_v18 = vld.sshfl [vmem:[%s4170_s0 + $0x1c] sm:$0x33 pattern:$0x75316420] }
 0x361   :  { %2683 = vmatpush3.bf16.msra.mxu1 %v3360_v22  ;;  %v2352_v22 = vld.sshfl [vmem:[%s4170_s0 + $0x14] sm:$0x33 pattern:$0x75316420] }
 0x362   :  { %2684 = vmatprep.subr.bf16.mxu1 %v3372_v24  ;;  %2937 = vmatpush3.bf16.msra.mxu0 %v3077_v20  ;;  %v1256_v23 = vcombine.high %v2352_v22, %v2352_v22  ;;  %v1453_v20 = vrot.slane %v2367_v17, %v3427_v41  ;;  %v3085_v17 = vld [vmem:[%s4173_s3 + $0xd8] sm:$0xff]  }
 0x363   :  { %2694 = vmatprep.subr.bf16.mxu0 %v3732_v21 }
 0x364   :  { %v1270_v24 = vrot.slane %v1256_v23, %v3427_v41 }
 0x365   :  { %2685 = vmatpush3.bf16.msra.mxu1 %v3384_v26  ;;  %v1263_v26 = vrot.slane %v2352_v22, %v3427_v41 }
 0x366   :  { %2686 = vmatprep.subr.bf16.mxu1 %v3396_v29  ;;  %1309 = vmatprep.mubr.bf16.mxu1 %v1270_v24  ;;  %v1272_v42 = vcombine.high %v1270_v24, %v1270_v24 }
 0x367   :  { %v1271_v56 = vcombine.high %v1263_v26, %v1263_v26 }
 0x369   :  { %2687 = vmatpush3.bf16.msra.mxu1 %v3408_v31 }
 0x36a   :  { %2942 = vmatprep.subr.bf16.mxu1 %v3168_v51 }
 0x36c   :  { %1310 = vmatmul.mubr.bf16.vlgmr.msra.gmra.mrb[32].mxu1 %v1263_v26 }
 0x36d   :  { %2950 = vmatprep.mubr.msk.bf16.mxu1 %vm3169_vm0, %v3168_v51  ;;  %2943 = vmatpush3.bf16.msra.mxu1 %v3078_v35  ;;  %v3965_v35 = vld [vmem:[%s4171_s1 + $0x38] sm:$0xff]  }
 0x36e   :  { %2944 = vmatprep.subr.bf16.mxu1 %v3168_v51 }
 0x371   :  { %2945 = vmatpush3.bf16.msra.mxu1 %v3079_v57  ;;  %v3082_v57 = vld [vmem:[%s4173_s3 + $0xc0] sm:$0xff]  }
 0x372   :  { %2946 = vmatprep.subr.bf16.mxu1 %v3168_v51 }
 0x375   :  { %2947 = vmatpush3.bf16.msra.mxu1 %v3080_v15 }
 0x376   :  { %2948 = vmatprep.subr.bf16.mxu1 %v3168_v51 }
 0x379   :  { %2949 = vmatpush3.bf16.msra.mxu1 %v3081_v16  ;;  %v3084_v16 = vld [vmem:[%s4173_s3 + $0xd0] sm:$0xff]  }
 0x37a   :  { %2743 = vmatprep.subr.bf16.mxu1 %v3732_v21 }
 0x3ff   :  { %v1049_v29 = vpop.f32.mrb[24].mxu1 }
 0x400   :  { %v3743_v55 = vadd.f32 %v1049_v29, %v3653_v50  ;;  %v2928_v58 = vpop.f32.mrb[25].mxu1  ;;  %v3786_v50 = vld [vmem:[%s4171_s1 + $0x98] sm:$0xff]  }
 0x401   :  { %v1052_v36 = vpop.f32.mrb[26].mxu1 }
 0x402   :  { %v2929_v37 = vpop.f32.mrb[27].mxu1 }
 0x41f   :  { %v2661_v39 = vpop.f32.mrb[28].mxu1 }
 0x420   :  { %v2662_v0 = vpop.f32.mrb[29].mxu1 }
 0x421   :  { %v2663_v2 = vadd.f32 %v2662_v0, %v2661_v39  ;;  %v2664_v4 = vpop.f32.mrb[30].mxu1 }
 0x422   :  { %v2665_v6 = vpop.f32.mrb[31].mxu1 }
 0x423   :  { %v1162_v8 = vadd.f32 %v2663_v2, %v1122_v38  ;;  %v1462_v6 = vcombine.high %v1460_v19, %v1460_v19 }
 0x425   :  { %v1167_v40 = vmax.f32 %v1162_v8, 0.0 }
 0x427   :  { %v1168_v43 = vpack.c.bf16 %v1167_v40, %v1167_v40  ;;  %v3932_v40 = vld [vmem:[%s4171_s1 + $0xb0] sm:$0xff]  }
 0x429   :  { %2939 = vmatmul.mubr.msk.bf16.vlgmr.msra.gmra.mrb[24].mxu0 %vm565_vm1, %v1168_v43  ;;  %v1461_v43 = vcombine.high %v1453_v20, %v1453_v20 }
 0x42a   :  { %2695 = vmatpush3.bf16.msra.mxu0 %v3750_v44  ;;  %1349 = vmatprep.mubr.bf16.mxu0 %v1272_v42  ;;  %v3938_v42 = vld [vmem:[%s4171_s1 + $0xf8] sm:$0xff]  }
 0x42b   :  { %2696 = vmatprep.subr.bf16.mxu0 %v3756_v45 }
 0x42e   :  { %2697 = vmatpush3.bf16.msra.mxu0 %v3762_v46 }
 0x42f   :  { %2698 = vmatprep.subr.bf16.mxu0 %v3768_v47 }
 0x432   :  { %2699 = vmatpush3.bf16.msra.mxu0 %v3774_v48 }
 0x433   :  { %2700 = vmatprep.subr.bf16.mxu0 %v3780_v49 }
 0x436   :  { %2701 = vmatpush3.bf16.msra.mxu0 %v3786_v50 }
 0x437   :  { %2702 = vmatprep.subr.bf16.mxu0 %v3792_v52 }
 0x43a   :  { %2703 = vmatpush3.bf16.msra.mxu0 %v3798_v1 }
 0x43b   :  { %2704 = vmatprep.subr.bf16.mxu0 %v3804_v53 }
 0x43e   :  { %2705 = vmatpush3.bf16.msra.mxu0 %v3810_v54 }
 0x43f   :  { %2706 = vmatprep.subr.bf16.mxu0 %v3378_v25  ;;  %v3825_v25 = vld [vmem:[%s4171_s1 + $0x10] sm:$0xff]   ;;  %v2688_v3 = vpop.f32.mrb[32].mxu1 }
 0x440   :  { %v2689_v10 = vpop.f32.mrb[33].mxu1 }
 0x441   :  { %v2690_v12 = vadd.f32 %v2689_v10, %v2688_v3  ;;  %v3083_v3 = vld [vmem:[%s4173_s3 + $0xc8] sm:$0xff]  }
 0x442   :  { %2707 = vmatpush3.bf16.msra.mxu0 %v3390_v27  ;;  %v3831_v27 = vld [vmem:[%s4171_s1 + $0x58] sm:$0xff]  }
 0x443   :  { %2708 = vmatprep.subr.bf16.mxu0 %v3402_v30  ;;  %v3837_v30 = vld [vmem:[%s4171_s1 + $0x18] sm:$0xff]   ;;  %v1312_v58 = vadd.f32 %v2690_v12, %v3512_v60 }
 0x446   :  { %2709 = vmatpush3.bf16.msra.mxu0 %v3414_v32  ;;  %v3843_v32 = vld [vmem:[%s4171_s1 + $0x60] sm:$0xff]  }
 0x447   :  { %2721 = vmatprep.subr.bf16.mxu0 %v3675_v5 }
 0x449   :  { %1350 = vmatmul.mubr.bf16.vlgmr.msra.gmra.mrb[28].mxu0 %v1271_v56  ;;  %v3944_v56 = vld [vmem:[%s4171_s1 + $0xb8] sm:$0xff]  }
 0x44a   :  { %2722 = vmatpush3.bf16.msra.mxu0 %v3681_v7  ;;  %1499 = vmatprep.mubr.bf16.mxu0 %v1460_v19  ;;  %v1636_v19 = vcombine.high %v2382_v18, %v2382_v18 }
 0x44b   :  { %2723 = vmatprep.subr.bf16.mxu0 %v3687_v9 }
 0x44e   :  { %2724 = vmatpush3.bf16.msra.mxu0 %v3693_v11 }
 0x44f   :  { %2725 = vmatprep.subr.bf16.mxu0 %v3699_v13 }
 0x452   :  { %2726 = vmatpush3.bf16.msra.mxu0 %v3825_v25 }
 0x453   :  { %2727 = vmatprep.subr.bf16.mxu0 %v3831_v27 }
 0x456   :  { %2728 = vmatpush3.bf16.msra.mxu0 %v3837_v30 }
 0x457   :  { %2729 = vmatprep.subr.bf16.mxu0 %v3843_v32 }
 0x45a   :  { %2730 = vmatpush3.bf16.msra.mxu0 %v3849_v59 }
 0x45b   :  { %2731 = vmatprep.subr.bf16.mxu0 %v3855_v61 }
 0x45e   :  { %2732 = vmatpush3.bf16.msra.mxu0 %v3861_v62 }
 0x45f   :  { %2733 = vmatprep.subr.bf16.mxu0 %v3867_v63 }
 0x462   :  { %2734 = vmatpush3.bf16.msra.mxu0 %v3873_v33 }
 0x463   :  { %2735 = vmatprep.subr.bf16.mxu0 %v3879_v34 }
 0x466   :  { %2736 = vmatpush3.bf16.msra.mxu0 %v3408_v31  ;;  %v2691_v31 = vpop.f32.mrb[34].mxu1 }
 0x467   :  { %2954 = vmatprep.subr.bf16.mxu0 %v3168_v51  ;;  %v2692_v14 = vpop.f32.mrb[35].mxu1 }
 0x469   :  { %1500 = vmatmul.mubr.bf16.vlgmr.msra.gmra.mrb[32].mxu0 %v1453_v20  ;;  %v1650_v20 = vrot.slane %v1636_v19, %v3427_v41 }
 0x46a   :  { %2962 = vmatprep.mubr.msk.bf16.mxu0 %vm3169_vm0, %v3168_v51  ;;  %2955 = vmatpush3.bf16.msra.mxu0 %v3082_v57 }
 0x46b   :  { %2956 = vmatprep.subr.bf16.mxu0 %v3168_v51 }
 0x46e   :  { %2957 = vmatpush3.bf16.msra.mxu0 %v3083_v3 }
 0x46f   :  { %2958 = vmatprep.subr.bf16.mxu0 %v3168_v51 }
 0x472   :  { %2959 = vmatpush3.bf16.msra.mxu0 %v3084_v16 }
 0x473   :  { %2960 = vmatprep.subr.bf16.mxu0 %v3168_v51 }
 0x476   :  { %2961 = vmatpush3.bf16.msra.mxu0 %v3085_v17 }
 0x477   :  { %2792 = vmatprep.subr.bf16.mxu0 %v3732_v21 }
 0x4fc   :  { %v1239_v22 = vpop.f32.mrb[24].mxu0 }
 0x4fd   :  { %v3908_v23 = vadd.f32 %v1239_v22, %v3743_v55  ;;  %v2940_v24 = vpop.f32.mrb[25].mxu0  ;;  %v3926_v55 = vld [vmem:[%s4171_s1 + $0xf0] sm:$0xff]   ;;  %v1643_v22 = vrot.slane %v2382_v18, %v3427_v41 }
 0x4fe   :  { %v1242_v26 = vpop.f32.mrb[26].mxu0 }
 0x4ff   :  { %v2941_v29 = vpop.f32.mrb[27].mxu0 }
 0x51c   :  { %v2710_v36 = vpop.f32.mrb[28].mxu0 }
 0x51d   :  { %v2711_v37 = vpop.f32.mrb[29].mxu0 }
 0x51e   :  { %v2712_v38 = vadd.f32 %v2711_v37, %v2710_v36  ;;  %v2713_v39 = vpop.f32.mrb[30].mxu0 }
 0x51f   :  { %v2714_v0 = vpop.f32.mrb[31].mxu0 }
 0x520   :  { %v1352_v2 = vadd.f32 %v2712_v38, %v1312_v58 }
 0x522   :  { %v1357_v4 = vmax.f32 %v1352_v2, 0.0 }
 0x524   :  { %v1358_v8 = vpack.c.bf16 %v1357_v4, %v1357_v4 }
 0x526   :  { %2951 = vmatmul.mubr.msk.bf16.vlgmr.msra.gmra.mrb[36].mxu1 %vm565_vm1, %v1358_v8 }
 0x527   :  { %2744 = vmatpush3.bf16.msra.mxu1 %v3750_v44  ;;  %1539 = vmatprep.mubr.bf16.mxu1 %v1462_v6 }
 0x528   :  { %2745 = vmatprep.subr.bf16.mxu1 %v3756_v45 }
 0x52b   :  { %2746 = vmatpush3.bf16.msra.mxu1 %v3762_v46 }
 0x52c   :  { %2747 = vmatprep.subr.bf16.mxu1 %v3768_v47 }
 0x52f   :  { %2748 = vmatpush3.bf16.msra.mxu1 %v3774_v48 }
 0x530   :  { %2749 = vmatprep.subr.bf16.mxu1 %v3780_v49 }
 0x533   :  { %2750 = vmatpush3.bf16.msra.mxu1 %v3786_v50 }
 0x534   :  { %2751 = vmatprep.subr.bf16.mxu1 %v3792_v52 }
 0x537   :  { %2752 = vmatpush3.bf16.msra.mxu1 %v3798_v1 }
 0x538   :  { %2753 = vmatprep.subr.bf16.mxu1 %v3804_v53 }
 0x53b   :  { %2754 = vmatpush3.bf16.msra.mxu1 %v3810_v54 }
 0x53c   :  { %2755 = vmatprep.subr.bf16.mxu1 %v3926_v55  ;;  %v2737_v10 = vpop.f32.mrb[32].mxu0 }
 0x53d   :  { %v2738_v12 = vpop.f32.mrb[33].mxu0 }
 0x53e   :  { %v2739_v31 = vadd.f32 %v2738_v12, %v2737_v10  ;;  %v2740_v14 = vpop.f32.mrb[34].mxu0 }
 0x53f   :  { %2756 = vmatpush3.bf16.msra.mxu1 %v3932_v40  ;;  %v2741_v15 = vpop.f32.mrb[35].mxu0 }
 0x540   :  { %2757 = vmatprep.subr.bf16.mxu1 %v3938_v42  ;;  %v1502_v37 = vadd.f32 %v2739_v31, %v3512_v60 }
 0x543   :  { %2758 = vmatpush3.bf16.msra.mxu1 %v3944_v56 }
 0x544   :  { %2770 = vmatprep.subr.bf16.mxu1 %v3675_v5 }
 0x546   :  { %1540 = vmatmul.mubr.bf16.vlgmr.msra.gmra.mrb[40].mxu1 %v1461_v43  ;;  %v1652_v43 = vcombine.high %v1650_v20, %v1650_v20 }
 0x547   :  { %2771 = vmatpush3.bf16.msra.mxu1 %v3681_v7  ;;  %1689 = vmatprep.mubr.bf16.mxu1 %v1650_v20 }
 0x548   :  { %2772 = vmatprep.subr.bf16.mxu1 %v3687_v9 }
 0x54b   :  { %2773 = vmatpush3.bf16.msra.mxu1 %v3693_v11 }
 0x54c   :  { %2774 = vmatprep.subr.bf16.mxu1 %v3699_v13 }
 0x54f   :  { %2775 = vmatpush3.bf16.msra.mxu1 %v3825_v25 }
 0x550   :  { %2776 = vmatprep.subr.bf16.mxu1 %v3831_v27 }
 0x553   :  { %2777 = vmatpush3.bf16.msra.mxu1 %v3837_v30 }
 0x554   :  { %2778 = vmatprep.subr.bf16.mxu1 %v3843_v32 }
 0x557   :  { %2779 = vmatpush3.bf16.msra.mxu1 %v3849_v59 }
 0x558   :  { %2780 = vmatprep.subr.bf16.mxu1 %v3855_v61 }
 0x55b   :  { %2781 = vmatpush3.bf16.msra.mxu1 %v3861_v62 }
 0x55c   :  { %2782 = vmatprep.subr.bf16.mxu1 %v3867_v63 }
 0x55f   :  { %2783 = vmatpush3.bf16.msra.mxu1 %v3873_v33 }
 0x560   :  { %2784 = vmatprep.subr.bf16.mxu1 %v3879_v34 }
 0x563   :  { %2785 = vmatpush3.bf16.msra.mxu1 %v3965_v35 }
 0x564   :  { %2966 = vmatprep.subr.bf16.mxu1 %v3168_v51 }
 0x566   :  { %1690 = vmatmul.mubr.bf16.vlgmr.msra.gmra.mrb[44].mxu1 %v1643_v22 }
 0x567   :  { %2974 = vmatprep.mubr.msk.bf16.mxu1 %vm3169_vm0, %v3168_v51 }
 0x5f9   :  { %v1429_v24 = vpop.f32.mrb[36].mxu1 }
 0x5fa   :  { %v3993_v26 = vadd.f32 %v1429_v24, %v3908_v23  ;;  %v2952_v29 = vpop.f32.mrb[37].mxu1  ;;  %v1651_v23 = vcombine.high %v1643_v22, %v1643_v22  ;;  %v3142_v22 = vld [vmem:[%s4172_s2] ss:$0 sm:$0xff] }
 0x5fb   :  { %v1432_v58 = vpop.f32.mrb[38].mxu1 }
 0x5fc   :  { %v2953_v36 = vpop.f32.mrb[39].mxu1 }
 0x619   :  { %v2759_v38 = vpop.f32.mrb[40].mxu1 }
 0x61a   :  { %v2760_v39 = vpop.f32.mrb[41].mxu1 }
 0x61b   :  { %v2761_v0 = vadd.f32 %v2760_v39, %v2759_v38  ;;  %v2762_v2 = vpop.f32.mrb[42].mxu1 }
 0x61c   :  { %v2763_v4 = vpop.f32.mrb[43].mxu1  ;;  %v3096_v2 = vld [vmem:[%s4175_s5 + $0x10] sm:$0xff]  }
 0x61d   :  { %v1542_v6 = vadd.f32 %v2761_v0, %v1502_v37  ;;  %v3097_v4 = vld [vmem:[%s4175_s5 + $0x18] sm:$0xff]  }
 0x61f   :  { %v1547_v8 = vmax.f32 %v1542_v6, 0.0  ;;  %v3098_v6 = vld [vmem:[%s4177_s7] sm:$0xff]  }
 0x621   :  { %v1548_v57 = vpack.c.bf16 %v1547_v8, %v1547_v8  ;;  %v3099_v8 = vld [vmem:[%s4177_s7 + $0x8] sm:$0xff]  }
 0x623   :  { %2963 = vmatmul.mubr.msk.bf16.vlgmr.msra.gmra.mrb[36].mxu0 %vm565_vm1, %v1548_v57  ;;  %v3101_v57 = vld [vmem:[%s4177_s7 + $0x18] sm:$0xff]  }
 0x624   :  { %2793 = vmatpush3.bf16.msra.mxu0 %v3750_v44  ;;  %1729 = vmatprep.mubr.bf16.mxu0 %v1652_v43  ;;  %v3100_v43 = vld [vmem:[%s4177_s7 + $0x10] sm:$0xff]  }
 0x625   :  { %2794 = vmatprep.subr.bf16.mxu0 %v3756_v45 }
 0x628   :  { %2795 = vmatpush3.bf16.msra.mxu0 %v3762_v46 }
 0x629   :  { %2796 = vmatprep.subr.bf16.mxu0 %v3768_v47 }
 0x62c   :  { %2797 = vmatpush3.bf16.msra.mxu0 %v3774_v48 }
 0x62d   :  { %2798 = vmatprep.subr.bf16.mxu0 %v3780_v49 }
 0x630   :  { %2799 = vmatpush3.bf16.msra.mxu0 %v3786_v50 }
 0x631   :  { %2800 = vmatprep.subr.bf16.mxu0 %v3792_v52 }
 0x634   :  { %2801 = vmatpush3.bf16.msra.mxu0 %v3798_v1 }
 0x635   :  { %2802 = vmatprep.subr.bf16.mxu0 %v3804_v53 }
 0x638   :  { %2803 = vmatpush3.bf16.msra.mxu0 %v3810_v54 }
 0x639   :  { %2804 = vmatprep.subr.bf16.mxu0 %v3926_v55 }
 0x63c   :  { %2805 = vmatpush3.bf16.msra.mxu0 %v3932_v40 }
 0x63d   :  { %2806 = vmatprep.subr.bf16.mxu0 %v3938_v42 }
 0x640   :  { %2807 = vmatpush3.bf16.msra.mxu0 %v3944_v56 }
 0x641   :  { %2819 = vmatprep.subr.bf16.mxu0 %v3675_v5  ;;  %v3086_v5 = vld [vmem:[%s4173_s3 + $0xe0] sm:$0xff]  }
 0x642   :  { %2967 = vmatpush3.bf16.msra.mxu1 %v3086_v5  ;;  %v3103_v5 = vld [vmem:[%s4177_s7 + $0x28] sm:$0xff]  }
 0x643   :  { %1730 = vmatmul.mubr.bf16.vlgmr.msra.gmra.mrb[40].mxu0 %v1651_v23  ;;  %2968 = vmatprep.subr.bf16.mxu1 %v3168_v51  ;;  %v3102_v23 = vld [vmem:[%s4177_s7 + $0x20] sm:$0xff]  }
 0x644   :  { %2820 = vmatpush3.bf16.msra.mxu0 %v3681_v7  ;;  %v3087_v7 = vld [vmem:[%s4173_s3 + $0xe8] sm:$0xff]  }
 0x645   :  { %2821 = vmatprep.subr.bf16.mxu0 %v3687_v9  ;;  %v2786_v9 = vpop.f32.mrb[44].mxu1 }
 0x646   :  { %2969 = vmatpush3.bf16.msra.mxu1 %v3087_v7 }
 0x647   :  { %2970 = vmatprep.subr.bf16.mxu1 %v3168_v51 }
 0x648   :  { %2822 = vmatpush3.bf16.msra.mxu0 %v3693_v11  ;;  %v2787_v11 = vpop.f32.mrb[45].mxu1 }
 0x649   :  { %2823 = vmatprep.subr.bf16.mxu0 %v3699_v13  ;;  %v2788_v13 = vadd.f32 %v2787_v11, %v2786_v9  ;;  %v2411_v9 = vld [vmem:[%s4174_s4] ss:$0 sm:$0xff] }
 0x64b   :  { %v1692_v10 = vadd.f32 %v2788_v13, %v3512_v60 }
 0x64c   :  { %2824 = vmatpush3.bf16.msra.mxu0 %v3825_v25  ;;  %v2789_v25 = vpop.f32.mrb[46].mxu1 }
 0x64d   :  { %2825 = vmatprep.subr.bf16.mxu0 %v3831_v27  ;;  %v2790_v27 = vpop.f32.mrb[47].mxu1 }
 0x650   :  { %2826 = vmatpush3.bf16.msra.mxu0 %v3837_v30  ;;  %v3088_v30 = vld [vmem:[%s4173_s3 + $0xf0] sm:$0xff]  }
 0x651   :  { %2827 = vmatprep.subr.bf16.mxu0 %v3843_v32  ;;  %2971 = vmatpush3.bf16.msra.mxu1 %v3088_v30  ;;  %v3089_v32 = vld [vmem:[%s4173_s3 + $0xf8] sm:$0xff]  }
 0x652   :  { %2972 = vmatprep.subr.bf16.mxu1 %v3168_v51 }
 0x654   :  { %2828 = vmatpush3.bf16.msra.mxu0 %v3849_v59  ;;  %v2397_v59 = vld.sshfl [vmem:[%s4170_s0 + $0x20] sm:$0x33 pattern:$0x75316420] }
 0x655   :  { %2829 = vmatprep.subr.bf16.mxu0 %v3855_v61  ;;  %2973 = vmatpush3.bf16.msra.mxu1 %v3089_v32  ;;  %v1826_v61 = vcombine.high %v2397_v59, %v2397_v59 }
 0x656   :  { %2841 = vmatprep.subr.bf16.mxu1 %v3732_v21 }
 0x658   :  { %2830 = vmatpush3.bf16.msra.mxu0 %v3861_v62  ;;  %v1840_v62 = vrot.slane %v1826_v61, %v3427_v41  ;;  %v3104_v61 = vld [vmem:[%s4177_s7 + $0x30] sm:$0xff]  }
 0x659   :  { %2831 = vmatprep.subr.bf16.mxu0 %v3867_v63  ;;  %v1833_v63 = vrot.slane %v2397_v59, %v3427_v41 }
 0x65a   :  { %1879 = vmatprep.mubr.bf16.mxu0 %v1840_v62  ;;  %v1842_v18 = vcombine.high %v1840_v62, %v1840_v62  ;;  %v3105_v62 = vld [vmem:[%s4177_s7 + $0x38] sm:$0xff]  }
 0x65b   :  { %v1841_v60 = vcombine.high %v1833_v63, %v1833_v63 }
 0x65c   :  { %2832 = vmatpush3.bf16.msra.mxu0 %v3873_v33 }
 0x65d   :  { %2833 = vmatprep.subr.bf16.mxu0 %v3879_v34 }
 0x660   :  { %2834 = vmatpush3.bf16.msra.mxu0 %v3965_v35 }
 0x661   :  { %2978 = vmatprep.subr.bf16.mxu0 %v3168_v51 }
 0x663   :  { %1880 = vmatmul.mubr.bf16.vlgmr.msra.gmra.mrb[44].mxu0 %v1833_v63  ;;  %v2412_v63 = vld [vmem:[%s4176_s6] ss:$0 sm:$0xff]  ;;  %s3170_s6 = smov [#allocation2]  }
 0x664   :  { %2986 = vmatprep.mubr.msk.bf16.mxu0 %vm3169_vm0, %v3168_v51  ;;  %s2242_s7 = sshll.u32 %s3170_s6, 4  ;;  %s2243_s7 = int_to_ptr.vmem [resolvable:$true] %s2242_s7 }
 0x665   :  { %p3148_p1 = scmp.lt.s32.totalorder %s2243_s7, %s2243_s7 }
 0x6f6   :  { %v1619_v33 = vpop.f32.mrb[36].mxu0 }
 0x6f7   :  { %v1625_v34 = vadd.f32 %v1619_v33, %v3993_v26  ;;  %v2964_v35 = vpop.f32.mrb[37].mxu0 }
 0x6f8   :  { %v1622_v3 = vpop.f32.mrb[38].mxu0 }
 0x6f9   :  { %v2965_v21 = vpop.f32.mrb[39].mxu0 }
 0x716   :  { %v2808_v12 = vpop.f32.mrb[40].mxu0 }
 0x717   :  { %v2809_v31 = vpop.f32.mrb[41].mxu0 }
 0x718   :  { %v2810_v14 = vadd.f32 %v2809_v31, %v2808_v12  ;;  %v2811_v15 = vpop.f32.mrb[42].mxu0  ;;  %v2214_v31 = vand.u32 127, %v120_v28 }
 0x719   :  { %v2812_v16 = vpop.f32.mrb[43].mxu0 }
 0x71a   :  { %v1732_v17 = vadd.f32 %v2810_v14, %v1692_v10  ;;  %vm2230_vm3 = vcmp.eq.s32.totalorder %v2214_v31, 6  ;;  %vm2215_vm4 = vcmp.lt.s32.totalorder %v2214_v31, 6 }
 0x71c   :  { %v1737_v41 = vmax.f32 %v1732_v17, 0.0 }
 0x71e   :  { %v1738_v19 = vpack.c.bf16 %v1737_v41, %v1737_v41 }
 0x720   :  { %2975 = vmatmul.mubr.msk.bf16.vlgmr.msra.gmra.mrb[48].mxu1 %vm565_vm1, %v1738_v19 }
 0x721   :  { %2842 = vmatpush3.bf16.msra.mxu1 %v3750_v44  ;;  %1919 = vmatprep.mubr.bf16.mxu1 %v1842_v18  ;;  %v3090_v44 = vld [vmem:[%s4173_s3 + $0x100] sm:$0xff]  }
 0x722   :  { %2843 = vmatprep.subr.bf16.mxu1 %v3756_v45  ;;  %2979 = vmatpush3.bf16.msra.mxu0 %v3090_v44  ;;  %v3091_v45 = vld [vmem:[%s4173_s3 + $0x108] sm:$0xff]  }
 0x723   :  { %2980 = vmatprep.subr.bf16.mxu0 %v3168_v51 }
 0x725   :  { %2844 = vmatpush3.bf16.msra.mxu1 %v3762_v46 }
 0x726   :  { %2845 = vmatprep.subr.bf16.mxu1 %v3768_v47  ;;  %2981 = vmatpush3.bf16.msra.mxu0 %v3091_v45 }
 0x727   :  { %2982 = vmatprep.subr.bf16.mxu0 %v3168_v51 }
 0x729   :  { %2846 = vmatpush3.bf16.msra.mxu1 %v3774_v48 }
 0x72a   :  { %2847 = vmatprep.subr.bf16.mxu1 %v3780_v49 }
 0x72d   :  { %2848 = vmatpush3.bf16.msra.mxu1 %v3786_v50 }
 0x72e   :  { %2849 = vmatprep.subr.bf16.mxu1 %v3792_v52  ;;  %v3092_v52 = vld [vmem:[%s4173_s3 + $0x110] sm:$0xff]  }
 0x72f   :  { %2983 = vmatpush3.bf16.msra.mxu0 %v3092_v52 }
 0x730   :  { %2984 = vmatprep.subr.bf16.mxu0 %v3168_v51 }
 0x731   :  { %2850 = vmatpush3.bf16.msra.mxu1 %v3798_v1  ;;  %v3093_v1 = vld [vmem:[%s4173_s3 + $0x118] sm:$0xff]  }
 0x732   :  { %2851 = vmatprep.subr.bf16.mxu1 %v3804_v53  ;;  %v3094_v53 = vld [vmem:[%s4175_s5] sm:$0xff]  }
 0x733   :  { %2985 = vmatpush3.bf16.msra.mxu0 %v3093_v1 }
 0x734   :  { %3002 = vmatprep.subr.bf16.mxu0 %v3168_v51 }
 0x735   :  { %2852 = vmatpush3.bf16.msra.mxu1 %v3810_v54  ;;  %v3095_v54 = vld [vmem:[%s4175_s5 + $0x8] sm:$0xff]  }
 0x736   :  { %2853 = vmatprep.subr.bf16.mxu1 %v3926_v55  ;;  %v2835_v46 = vpop.f32.mrb[44].mxu0 }
 0x737   :  { %v2836_v47 = vpop.f32.mrb[45].mxu0 }
 0x738   :  { %v2837_v48 = vadd.f32 %v2836_v47, %v2835_v46  ;;  %v2838_v49 = vpop.f32.mrb[46].mxu0 }
 0x739   :  { %2854 = vmatpush3.bf16.msra.mxu1 %v3932_v40  ;;  %v2839_v50 = vpop.f32.mrb[47].mxu0 }
 0x73a   :  { %2855 = vmatprep.subr.bf16.mxu1 %v3938_v42  ;;  %v1882_v24 = vadd.f32 %v3142_v22, %v2837_v48 }
 0x73d   :  { %2856 = vmatpush3.bf16.msra.mxu1 %v3944_v56 }
 0x73e   :  { %2990 = vmatprep.subr.bf16.mxu1 %v3168_v51 }
 0x740   :  { %1920 = vmatmul.mubr.bf16.vlgmr.msra.gmra.mrb[52].mxu1 %v1841_v60 }
 0x741   :  { %2998 = vmatprep.mubr.msk.bf16.mxu1 %vm3169_vm0, %v3168_v51  ;;  %2991 = vmatpush3.bf16.msra.mxu1 %v3094_v53 }
 0x742   :  { %2992 = vmatprep.subr.bf16.mxu1 %v3168_v51 }
 0x745   :  { %2993 = vmatpush3.bf16.msra.mxu1 %v3095_v54 }
 0x746   :  { %2994 = vmatprep.subr.bf16.mxu1 %v3168_v51 }
 0x749   :  { %2995 = vmatpush3.bf16.msra.mxu1 %v3096_v2 }
 0x74a   :  { %2996 = vmatprep.subr.bf16.mxu1 %v3168_v51 }
 0x74d   :  { %2997 = vmatpush3.bf16.msra.mxu1 %v3097_v4 }
 0x7f3   :  { %v1809_v55 = vpop.f32.mrb[48].mxu1 }
 0x7f4   :  { %v1815_v40 = vadd.f32 %v1809_v55, %v1625_v34  ;;  %v2976_v42 = vpop.f32.mrb[49].mxu1 }
 0x7f5   :  { %v1812_v56 = vpop.f32.mrb[50].mxu1 }
 0x7f6   :  { %v2977_v20 = vpop.f32.mrb[51].mxu1 }
 0x813   :  { %v2857_v26 = vpop.f32.mrb[52].mxu1 }
 0x814   :  { %v2858_v29 = vpop.f32.mrb[53].mxu1 }
 0x815   :  { %v2859_v58 = vadd.f32 %v2858_v29, %v2857_v26  ;;  %v2860_v36 = vpop.f32.mrb[54].mxu1 }
 0x816   :  { %v2861_v37 = vpop.f32.mrb[55].mxu1 }
 0x817   :  { %v1922_v38 = vadd.f32 %v2859_v58, %v1882_v24 }
 0x819   :  { %v1927_v39 = vmax.f32 %v1922_v38, 0.0 }
 0x81b   :  { %v1928_v0 = vpack.c.bf16 %v1927_v39, %v1927_v39 }
 0x81d   :  { %2987 = vmatmul.mubr.msk.bf16.vlgmr.msra.gmra.mrb[48].mxu0 %vm565_vm1, %v1928_v0 }
 0x81e   :  { %3018 = vmatprep.mubr.msk.bf16.mxu0 %vm3169_vm0, %v3168_v51  ;;  %3003 = vmatpush3.bf16.msra.mxu0 %v3098_v6 }
 0x81f   :  { %3004 = vmatprep.subr.bf16.mxu0 %v3168_v51 }
 0x822   :  { %3005 = vmatpush3.bf16.msra.mxu0 %v3099_v8 }
 0x823   :  { %3006 = vmatprep.subr.bf16.mxu0 %v3168_v51 }
 0x826   :  { %3007 = vmatpush3.bf16.msra.mxu0 %v3100_v43 }
 0x827   :  { %3008 = vmatprep.subr.bf16.mxu0 %v3168_v51 }
 0x82a   :  { %3009 = vmatpush3.bf16.msra.mxu0 %v3101_v57 }
 0x82b   :  { %3010 = vmatprep.subr.bf16.mxu0 %v3168_v51 }
 0x82e   :  { %3011 = vmatpush3.bf16.msra.mxu0 %v3102_v23 }
 0x82f   :  { %3012 = vmatprep.subr.bf16.mxu0 %v3168_v51 }
 0x832   :  { %3013 = vmatpush3.bf16.msra.mxu0 %v3103_v5 }
 0x833   :  { %3014 = vmatprep.subr.bf16.mxu0 %v3168_v51 }
 0x836   :  { %3015 = vmatpush3.bf16.msra.mxu0 %v3104_v61 }
 0x837   :  { %3016 = vmatprep.subr.bf16.mxu0 %v3168_v51  ;;  %v2418_v51 = vld [vmem:[%s4178_s8] ss:$0 sm:$0xff]  ;;  %s3143_s8 = scalar_lea.vmem %s2243_s7, 32 }
 0x838   :  { %p3144_p0 = scmp.ne.s32.totalorder %s2243_s7, %s3143_s8  ;;  %p3149_p2 = scmp.lt.s32.totalorder %s3143_s8, %s3143_s8 }
 0x83a   :  { %3017 = vmatpush3.bf16.msra.mxu0 %v3105_v62  ;;  %p3150_p3 = por %p3149_p2, %p3148_p1 }
 0x83c   :  { %p3151_p4 = pnand %p3150_p3, %p3144_p0 }
 0x8f0   :  { %v1999_v7 = vpop.f32.mrb[48].mxu0 }
 0x8f1   :  { %v2005_v11 = vadd.f32 %v1999_v7, %v1815_v40  ;;  %v2988_v13 = vpop.f32.mrb[49].mxu0 }
 0x8f2   :  { %v2002_v25 = vpop.f32.mrb[50].mxu0 }
 0x8f3   :  { %v2013_v27 = vadd.f32 %v2411_v9, %v2005_v11  ;;  %v2989_v30 = vpop.f32.mrb[51].mxu0 }
 0x8f5   :  { %v2014_v32 = vmax.f32 %v2013_v27, 0.0 }
 0x8f7   :  { %v2017_v59 = vpack.c.bf16 %v2014_v32, %v2014_v32  ;;  %2016 = vst.msk [vmem:[#allocation2] sm:$0x3] %vm2015_vm2, %v2014_v32 }
 0x8f9   :  { %2999 = vmatmul.mubr.msk.bf16.vlgmr.msra.gmra.mrb[56].mxu1 %vm565_vm1, %v2017_v59 }
 0x9cc   :  { %v2094_v33 = vpop.f32.mrb[56].mxu1 }
 0x9cd   :  { %v2095_v34 = vadd.f32 %v2412_v63, %v2094_v33  ;;  %v3000_v35 = vpop.f32.mrb[57].mxu1 }
 0x9ce   :  { %v2097_v3 = vpop.f32.mrb[58].mxu1 }
 0x9cf   :  { %v2100_v21 = vmax.f32 %v2095_v34, 0.0  ;;  %v3001_v10 = vpop.f32.mrb[59].mxu1 }
 0x9d1   :  { %v2101_v12 = vpack.c.bf16 %v2100_v21, %v2100_v21 }
 0x9d3   :  { %3019 = vmatmul.mubr.bf16.vlgmr.msra.gmra.mrb[52].mxu0 %v2101_v12 }
 0xaa6   :  { %v2207_v14 = vpop.f32.mrb[52].mxu0 }
 0xaa7   :  { %v2208_v15 = vadd.f32 %v2418_v51, %v2207_v14  ;;  %v3020_v16 = vpop.f32.mrb[53].mxu0 }
 0xaa8   :  { %v2210_v17 = vpop.f32.mrb[54].mxu0 }
 0xaa9   :  { %v2231_v41 = vsel %vm2230_vm3, %v2208_v15, 0.0  ;;  %v3021_v18 = vpop.f32.mrb[55].mxu0  ;;  %v2216_v19 = vsel %vm2215_vm4, %v2208_v15, -1e+30 }
 0xaaa   :  { %v2218_v60 = vsel %vm2217_vm5, %v2216_v19, -inf }
 0xaab   :  { %2219 = vmax.xlane.f32.xlu0 %v2218_v60 }
 0xb38   :  { %v2220_v44 = vpop.xlane.xlu0 %2219 }
 0xb39   :  { %v2221_v45 = vsub.f32 %v2216_v19, %v2220_v44 }
 0xb3b   :  { %v2222_v28 = vmul.f32 1.442695, %v2221_v45 }
 0xb3d   :  { %3106 = vpow2.f32 %v2222_v28 }
 0xb47   :  { %v3107_v46 = vpop.eup %3106 }
 0xb48   :  { %v2224_v47 = vsel %vm2215_vm4, %v3107_v46, 0.0 }
 0xb49   :  { %v2225_v48 = vsel %vm2217_vm5, %v2224_v47, 0.0 }
 0xb4a   :  { %2226 = vadd.xlane.f32.xlu0 %v2225_v48 }
 0xb4b   :  { %3154 = shalt.err (!%p3151_p4)
}
 0xb4c   :  { %s3155_s2 = scalar_lea.hbm %s4180_s10, 32 }
 0xb4d   :  { %p3156_p5 = scmp.ne.s32.totalorder %s4180_s10, %s3155_s2  ;;  %p3159_p6 = scmp.lt.u32.totalorder %s3155_s2, %s4180_s10 }
 0xb4f   :  { %p3161_p7 = pnand %p3159_p6, %p3156_p5 }
 0xb51   :  { %3164 = shalt.err (!%p3161_p7)
}
 0xb52   :  { %2245 = dma.vmem_to_hbm [thread:$0]  %s2243_s7, 32, %s4180_s10, [#allocation3]  }
 0xbd7   :  { %v2227_v49 = vpop.xlane.xlu0 %2226 }
 0xbd8   :  { %3108 = vrcp.f32 %v2227_v49 }
 0xbe2   :  { %v3109_v50 = vpop.eup %3108 }
 0xbe3   :  { %v2229_v52 = vmul.f32 %v3109_v50, %v2224_v47 }
 0xbe5   :  { %v2232_v1 = vsel %vm2215_vm4, %v2229_v52, %v2231_v41 }
 0xbe6   :  { %2233 = vst [vmem:[%s4179_s9] sm:$0x3] %v2232_v1 }
 0xbe7   :  { %3165 = dma.done.wait [#allocation3], 32  }
 0xbe8   :  { %3166 = vsyncadd [#allocation3], 4294967264 }
 0xbe9   :  { %2251 = vsyncpa [#allocation3], 1 }

</bundles_post_ra>
